<compile_context>
chip_gen: v7x
topology: tpu7x:2x2x1
jax: 0.10.0
libtpu: 0.0.40
codegen_flags: <defaults>
</compile_context>

<pallas_src>
import functools
import math

import jax
import jax.numpy as jnp
from jax.experimental import pallas as pl
from jax.experimental.pallas import tpu as pltpu

_MXU_DTYPE = jnp.bfloat16            # MXU operand dtype (accumulate in f32)


def _tpu_vmem_capacity_bytes():
    try:
        cap = getattr(pltpu.get_tpu_info(), "vmem_capacity_bytes", None)
    except Exception:
        cap = None
    return int(cap) if cap else 64 * 1024 * 1024     # conservative (v7x) fallback


_VMEM_CAP = _tpu_vmem_capacity_bytes()
# ~48 MiB on v7x (64 MiB physical), ~100 MiB on v5e/v6e (128 MiB physical).
_VMEM_LIMIT = int(max(min(_VMEM_CAP - 16 * 1024 * 1024, 100 * 1024 * 1024),
                      32 * 1024 * 1024))
_MAX_ROW_TILE = 512 if _VMEM_CAP <= 64 * 1024 * 1024 else 1024


def _const_spec(arr):
    """Full-array block, same block for every grid step (weights stay resident)."""
    # TODO(synk): once pipeline_mode=pl.Buffered(1) is confirmed supported in
    # pallas_call on the target jax build, use it here to stop double-buffering
    # resident weights (recovers VMEM headroom at production dims, esp. v7x).
    return pl.BlockSpec(arr.shape, lambda i, n=arr.ndim: (0,) * n)


def _row_block(rows, max_tile):
    """Largest row tile <= max_tile that divides `rows` (multiple of 8), else rows."""
    if rows <= max_tile:
        return rows
    for t in range(max_tile - (max_tile % 8), 7, -8):
        if rows % t == 0:
            return t
    # TODO(synk): pad/split awkward row counts instead of one huge block.
    return rows


# ---------------------------------------------------------------------------
# Fused multi-head-attention block kernel (one batch element per grid step)
# ---------------------------------------------------------------------------
def _make_mha_kernel(n_heads, return_attn, ln_eps):
    """refs layout:
         inputs : q[1,Lq,H], kv[1,Lk,H], mask[1,1,Mq,Lk],
                  wq,bq, wk,bk, wv,bv, wo,bo, w1a,w1b,b1, w2a,w2b,b2,
                  (gamma, beta   -- only if ln_eps is not None)
         outputs: out[1,Lq,H], (attn[1,nh,Lq,Lk] -- only if return_attn)
       All weight matrices are already bfloat16; biases / LN params are f32.
    """
    def kernel(*refs):
        q_in = refs[0][0]                 # [Lq, H] f32  (query == residual input)
        kv_in = refs[1][0]                # [Lk, H] f32  (key == value tensor)
        m = refs[2][0, 0]                 # [Mq, Lk] f32
        (wq, bq, wk, bk, wv, bv, wo, bo,
         w1a, w1b, b1, w2a, w2b, b2) = [r[...] for r in refs[3:17]]
        pos = 17
        if ln_eps is not None:
            gamma, beta = refs[pos][...], refs[pos + 1][...]
            pos += 2
        o_ref = refs[pos]
        a_ref = refs[pos + 1] if return_attn else None

        # Hoisted casts: one bf16 copy of each activation operand.
        q_bf = q_in.astype(_MXU_DTYPE)
        kv_bf = kv_in.astype(_MXU_DTYPE)

        # QKV projections (bf16 resident weights, f32 accumulation).
        # 1/sqrt(dh) is already folded into wq / bq at parameter-prep time.
        Q = jnp.dot(q_bf, wq, preferred_element_type=jnp.float32) + bq
        K = jnp.dot(kv_bf, wk, preferred_element_type=jnp.float32) + bk
        V = jnp.dot(kv_bf, wv, preferred_element_type=jnp.float32) + bv
        Qb = Q.astype(_MXU_DTYPE)
        Kb = K.astype(_MXU_DTYPE)
        Vb = V.astype(_MXU_DTYPE)

        H = Q.shape[-1]
        dh = H // n_heads
        x = None
        # Heads split in-kernel with static lane slices — no XLA transposes and
        # no per-(batch, head) grid steps.
        # TODO(synk): at production dims tile heads/q in the grid with a
        # flash-style online softmax over key tiles so VMEM stays bounded and
        # >=128-wide contractions fill the MXU (also gives both v7x TCs work
        # when B is 1 or odd).
        for h in range(n_heads):
            lo = h * dh
            qh, kh, vh = Qb[:, lo:lo + dh], Kb[:, lo:lo + dh], Vb[:, lo:lo + dh]
            # energy = qh @ kh^T (scale already folded into Q)
            energy = jax.lax.dot_general(
                qh, kh, (((1,), (1,)), ((), ())),
                preferred_element_type=jnp.float32)
            energy = jnp.where(m == 0.0, jnp.float32(-1e10), energy)
            # numerically-stable softmax over the key axis (f32)
            energy = energy - jnp.max(energy, axis=-1, keepdims=True)
            p = jnp.exp(energy)
            denom = jnp.sum(p, axis=-1, keepdims=True)
            # Exact reciprocal when the attention matrix is a returned value,
            # approximate (EUP) reciprocal when it is discarded.
            attn = p * pl.reciprocal(denom, approx=not return_attn)
            if return_attn:
                a_ref[0, h] = attn
            ov = jnp.dot(attn.astype(_MXU_DTYPE), vh,
                         preferred_element_type=jnp.float32)
            # Fold the head-concat into the output projection:
            #   concat_h(attn_h @ V_h) @ Wo == sum_h (attn_h @ V_h) @ Wo[h*dh:(h+1)*dh]
            contrib = jnp.dot(ov.astype(_MXU_DTYPE), wo[lo:lo + dh, :],
                              preferred_element_type=jnp.float32)
            x = contrib if x is None else x + contrib
        x = x + bo
        xb = x.astype(_MXU_DTYPE)

        # Gated combine:  cat([x, query]) @ W  ==  x @ W[:H] + query @ W[H:]
        x1 = jax.nn.sigmoid(
            jnp.dot(xb, w1a, preferred_element_type=jnp.float32)
            + jnp.dot(q_bf, w1b, preferred_element_type=jnp.float32) + b1)
        x2 = (jnp.dot(xb, w2a, preferred_element_type=jnp.float32)
              + jnp.dot(q_bf, w2b, preferred_element_type=jnp.float32) + b2)
        xg = x1 * x2

        if ln_eps is None:
            o_ref[0] = xg
        else:
            # fused residual + LayerNorm (biased variance, PyTorch semantics)
            y = q_in + xg
            mu = jnp.mean(y, axis=-1, keepdims=True)
            var = jnp.mean((y - mu) ** 2, axis=-1, keepdims=True)
            o_ref[0] = (y - mu) * jax.lax.rsqrt(var + ln_eps) * gamma + beta

    return kernel


def mha_block(p, query, keyval, mask, ln=None, return_attn=False, eps=1e-5):
    """One fused pallas_call for a MultiHeadAttentionLayer (optionally + residual+LN)."""
    B, Lq, H = query.shape
    Lk = keyval.shape[1]
    nh = p["n_heads"]
    if mask is None:                      # all-ones mask == no masking
        mask = jnp.ones((B, 1, 1, Lk), jnp.float32)
    Mq = mask.shape[2]

    weights = [p["wq"], p["bq"], p["wk"], p["bk"], p["wv"], p["bv"],
               p["wo"], p["bo"], p["w1a"], p["w1b"], p["b1"],
               p["w2a"], p["w2b"], p["b2"]]
    inputs = [query, keyval, mask] + weights
    in_specs = [
        pl.BlockSpec((1, Lq, H), lambda b: (b, 0, 0)),
        pl.BlockSpec((1, Lk, H), lambda b: (b, 0, 0)),
        pl.BlockSpec((1, 1, Mq, Lk), lambda b: (b, 0, 0, 0)),
    ] + [_const_spec(w) for w in weights]
    if ln is not None:
        inputs += [ln[0], ln[1]]
        in_specs += [_const_spec(ln[0]), _const_spec(ln[1])]

    out_shape = [jax.ShapeDtypeStruct((B, Lq, H), jnp.float32)]
    out_specs = [pl.BlockSpec((1, Lq, H), lambda b: (b, 0, 0))]
    if return_attn:
        # Only the attention matrix that is actually returned is written back.
        # TODO(synk): at production sizes tile this output over heads/q (and
        # consider a bf16 writeback) so its double-buffered block fits v7x VMEM.
        out_shape.append(jax.ShapeDtypeStruct((B, nh, Lq, Lk), jnp.float32))
        out_specs.append(pl.BlockSpec((1, nh, Lq, Lk), lambda b: (b, 0, 0, 0)))

    kernel = _make_mha_kernel(nh, return_attn, eps if ln is not None else None)
    outs = pl.pallas_call(
        kernel,
        grid=(B,),
        out_shape=tuple(out_shape),
        in_specs=in_specs,
        out_specs=tuple(out_specs),
        compiler_params=pltpu.CompilerParams(
            dimension_semantics=("parallel",),
            vmem_limit_bytes=_VMEM_LIMIT),
    )(*inputs)
    if return_attn:
        return outs[0], outs[1]
    return outs[0]


# ---------------------------------------------------------------------------
# Fused LN2(3-way residual) + FFN + residual + LN3 (row-tiled, weights resident)
# ---------------------------------------------------------------------------
def _ln(x, g, b, eps):
    mu = jnp.mean(x, axis=-1, keepdims=True)
    var = jnp.mean((x - mu) ** 2, axis=-1, keepdims=True)
    return (x - mu) * jax.lax.rsqrt(var + eps) * g + b


def _ln2_ffn_ln3_kernel(a_ref, b_ref, c_ref, g2_ref, beta2_ref,
                        w1_ref, b1_ref, w2_ref, b2_ref, g3_ref, beta3_ref,
                        o_ref, *, eps):
    # LN2 over the 3-way residual, then fc1->relu->fc2->relu, residual, LN3.
    y = _ln(a_ref[...] + b_ref[...] + c_ref[...],
            g2_ref[...], beta2_ref[...], eps)
    h = jnp.maximum(
        jnp.dot(y.astype(_MXU_DTYPE), w1_ref[...],
                preferred_element_type=jnp.float32) + b1_ref[...], 0.0)
    f = jnp.maximum(
        jnp.dot(h.astype(_MXU_DTYPE), w2_ref[...],
                preferred_element_type=jnp.float32) + b2_ref[...], 0.0)
    o_ref[...] = _ln(y + f, g3_ref[...], beta3_ref[...], eps)


def ln2_ffn_ln3(a, b, c, ln2_g, ln2_b, w1, b1, w2, b2, ln3_g, ln3_b, eps=1e-5):
    # TODO(synk): at production H/pf_dim, tile fc1 over pf_dim (N) and fc2 over
    # pf_dim (K, with a pl.when-initialized f32 accumulator) instead of keeping
    # w1/w2 as single full-array resident blocks.
    B, L, H = a.shape
    R = B * L
    tm = _row_block(R, _MAX_ROW_TILE)
    consts = [ln2_g, ln2_b, w1, b1, w2, b2, ln3_g, ln3_b]
    y = pl.pallas_call(
        functools.partial(_ln2_ffn_ln3_kernel, eps=eps),
        grid=(R // tm,),
        out_shape=jax.ShapeDtypeStruct((R, H), jnp.float32),
        in_specs=[pl.BlockSpec((tm, H), lambda i: (i, 0)),
                  pl.BlockSpec((tm, H), lambda i: (i, 0)),
                  pl.BlockSpec((tm, H), lambda i: (i, 0))]
                 + [_const_spec(w) for w in consts],
        out_specs=pl.BlockSpec((tm, H), lambda i: (i, 0)),
        compiler_params=pltpu.CompilerParams(
            dimension_semantics=("parallel",),
            vmem_limit_bytes=_VMEM_LIMIT),
    )(a.reshape(R, H), b.reshape(R, H), c.reshape(R, H), *consts)
    return y.reshape(B, L, H)


# ---------------------------------------------------------------------------
# Decoder layer forward (4 fused pallas_calls)
# ---------------------------------------------------------------------------
def decoder_layer(p, trg, enc_image, enc_src, src_mask, trg_mask):
    # TODO(synk): nn.Dropout is identity here (deterministic / eval semantics).
    # 1) self-attention + gated combine + residual + LN1  (attn not needed)
    trg1 = mha_block(p["self_attn"], trg, trg, trg_mask,
                     ln=(p["ln1_g"], p["ln1_b"]), return_attn=False)
    # 2) encoder cross-attention (attention matrix is returned)
    _trg0, attention_src = mha_block(p["enc_attn"], trg1, enc_src, src_mask,
                                     ln=None, return_attn=True)
    # 3) image cross-attention (attention matrix discarded -> never written)
    _trg1 = mha_block(p["enc_attn1"], trg1, enc_image, None,
                      ln=None, return_attn=False)
    # 4) trg = LN3(trg2 + relu(fc2(relu(fc1(trg2)))))  with trg2 = LN2(trg1+_trg0+_trg1)
    trg3 = ln2_ffn_ln3(trg1, _trg0, _trg1, p["ln2_g"], p["ln2_b"],
                       p["ffn_w1"], p["ffn_b1"], p["ffn_w2"], p["ffn_b2"],
                       p["ln3_g"], p["ln3_b"])
    return trg3, _trg0, _trg1, attention_src


# ---------------------------------------------------------------------------
# deterministic parameter init (PyTorch nn.Linear-style uniform bounds)
# ---------------------------------------------------------------------------
def _uniform(key, shape, fan_in):
    bound = 1.0 / math.sqrt(fan_in)
    return jax.random.uniform(key, shape, jnp.float32, -bound, bound)


def init_linear(key, in_dim, out_dim):
    kw, kb = jax.random.split(key)
    w = _uniform(kw, (in_dim, out_dim), in_dim)   # stored as [in, out]
    b = _uniform(kb, (1, out_dim), in_dim)
    return w, b


def init_mha(key, hid, n_heads):
    ks = jax.random.split(key, 6)
    wq, bq = init_linear(ks[0], hid, hid)
    wk, bk = init_linear(ks[1], hid, hid)
    wv, bv = init_linear(ks[2], hid, hid)
    wo, bo = init_linear(ks[3], hid, hid)
    w1, b1 = init_linear(ks[4], 2 * hid, hid)
    w2, b2 = init_linear(ks[5], 2 * hid, hid)
    return dict(n_heads=n_heads,
                wq=wq, bq=bq, wk=wk, bk=bk, wv=wv, bv=bv, wo=wo, bo=bo,
                w1a=w1[:hid], w1b=w1[hid:], b1=b1,
                w2a=w2[:hid], w2b=w2[hid:], b2=b2)


def init_decoder_layer(key, hid, n_heads, pf_dim):
    ks = jax.random.split(key, 5)
    params = dict(
        self_attn=init_mha(ks[0], hid, n_heads),
        enc_attn=init_mha(ks[1], hid, n_heads),
        enc_attn1=init_mha(ks[2], hid, n_heads),
        ln1_g=jnp.ones((1, hid), jnp.float32), ln1_b=jnp.zeros((1, hid), jnp.float32),
        ln2_g=jnp.ones((1, hid), jnp.float32), ln2_b=jnp.zeros((1, hid), jnp.float32),
        ln3_g=jnp.ones((1, hid), jnp.float32), ln3_b=jnp.zeros((1, hid), jnp.float32),
    )
    w1, b1 = init_linear(ks[3], hid, pf_dim)
    w2, b2 = init_linear(ks[4], pf_dim, hid)
    params.update(ffn_w1=w1, ffn_b1=b1, ffn_w2=w2, ffn_b2=b2)
    return params


# ---------------------------------------------------------------------------
# one-time parameter prep: fold 1/sqrt(dh) into wq/bq, cast matmul weights bf16
# ---------------------------------------------------------------------------
def _prep_mha(p):
    hid = p["wq"].shape[0]
    dh = hid // p["n_heads"]
    s = 1.0 / math.sqrt(dh)
    q = dict(p)
    q["wq"] = (p["wq"] * s).astype(_MXU_DTYPE)
    q["bq"] = p["bq"] * s                       # bias stays f32 (added post-MXU)
    for k in ("wk", "wv", "wo", "w1a", "w1b", "w2a", "w2b"):
        q[k] = p[k].astype(_MXU_DTYPE)
    return q


def prepare_params(p):
    out = dict(p)
    out["self_attn"] = _prep_mha(p["self_attn"])
    out["enc_attn"] = _prep_mha(p["enc_attn"])
    out["enc_attn1"] = _prep_mha(p["enc_attn1"])
    out["ffn_w1"] = p["ffn_w1"].astype(_MXU_DTYPE)
    out["ffn_w2"] = p["ffn_w2"].astype(_MXU_DTYPE)
    return out


# ---------------------------------------------------------------------------
# pure-JAX f32 reference (correctness gate for the bf16-MXU kernels)
# ---------------------------------------------------------------------------
def _ref_mha(p, query, key, value, mask):
    B, Lq, H = query.shape
    Lk = key.shape[1]
    nh = p["n_heads"]
    dh = H // nh

    def lin(x, w, b):
        return x @ w + b[0]

    Q = lin(query, p["wq"], p["bq"]).reshape(B, Lq, nh, dh).transpose(0, 2, 1, 3)
    K = lin(key, p["wk"], p["bk"]).reshape(B, Lk, nh, dh).transpose(0, 2, 1, 3)
    V = lin(value, p["wv"], p["bv"]).reshape(B, Lk, nh, dh).transpose(0, 2, 1, 3)
    energy = jnp.einsum("bhqd,bhkd->bhqk", Q, K) / math.sqrt(dh)
    if mask is not None:
        energy = jnp.where(mask == 0, -1e10, energy)
    attn = jax.nn.softmax(energy, axis=-1)
    x = jnp.einsum("bhqk,bhkd->bhqd", attn, V).transpose(0, 2, 1, 3).reshape(B, Lq, H)
    x = lin(x, p["wo"], p["bo"])
    xc = jnp.concatenate([x, query], axis=-1)
    w1 = jnp.concatenate([p["w1a"], p["w1b"]], axis=0)
    w2 = jnp.concatenate([p["w2a"], p["w2b"]], axis=0)
    x1 = jax.nn.sigmoid(xc @ w1 + p["b1"][0])
    x2 = xc @ w2 + p["b2"][0]
    return x1 * x2, attn


def _ref_ln(x, g, b, eps=1e-5):
    mu = x.mean(-1, keepdims=True)
    var = ((x - mu) ** 2).mean(-1, keepdims=True)
    return (x - mu) / jnp.sqrt(var + eps) * g[0] + b[0]


def _ref_decoder(p, trg, enc_image, enc_src, src_mask, trg_mask):
    _t, _ = _ref_mha(p["self_attn"], trg, trg, trg, trg_mask)
    trg = _ref_ln(trg + _t, p["ln1_g"], p["ln1_b"])
    _t0, a = _ref_mha(p["enc_attn"], trg, enc_src, enc_src, src_mask)
    _t1, _ = _ref_mha(p["enc_attn1"], trg, enc_image, enc_image, None)
    trg = _ref_ln(trg + _t0 + _t1, p["ln2_g"], p["ln2_b"])
    h = jnp.maximum(trg @ p["ffn_w1"] + p["ffn_b1"][0], 0.0)
    _t = jnp.maximum(h @ p["ffn_w2"] + p["ffn_b2"][0], 0.0)
    trg = _ref_ln(trg + _t, p["ln3_g"], p["ln3_b"])
    return trg, _t0, _t1, a


# ---------------------------------------------------------------------------
if __name__ == "__main__":
    hid_dim, n_heads, pf_dim = 32, 4, 64
    B, Lt, Ls, Li = 2, 8, 8, 8

    root = jax.random.PRNGKey(0)
    kp, kt, ks, ki = jax.random.split(root, 4)
    params = init_decoder_layer(kp, hid_dim, n_heads, pf_dim)
    kparams = prepare_params(params)     # bf16 weights + folded attention scale

    trg = jax.random.normal(kt, (B, Lt, hid_dim), jnp.float32)
    enc_src = jax.random.normal(ks, (B, Ls, hid_dim), jnp.float32)
    enc_image = jax.random.normal(ki, (B, Li, hid_dim), jnp.float32)
    # target mask: causal; source mask: all positions valid
    trg_mask = jnp.broadcast_to(
        jnp.tril(jnp.ones((Lt, Lt), jnp.float32)), (B, 1, Lt, Lt))
    src_mask = jnp.ones((B, 1, 1, Ls), jnp.float32)

    out = decoder_layer(kparams, trg, enc_image, enc_src, src_mask, trg_mask)
    out = jax.block_until_ready(out)

    # Gate against a pure-f32 reference. Kernels feed bf16 to the MXU (f32
    # accumulate) and store weights in bf16, so the tolerance is slightly
    # looser than pure f32 vs f32; real bugs (wrong mask / residual / head
    # split / LN fusion) produce O(1) errors.
    ref = _ref_decoder(params, trg, enc_image, enc_src, src_mask, trg_mask)
    for got, want in zip(out, ref):
        assert got.shape == want.shape, (got.shape, want.shape)
        assert jnp.allclose(got, want, atol=5e-2, rtol=5e-2), float(
            jnp.max(jnp.abs(got - want)))

    print("KERNEL_OK")
</pallas_src>

<mosaic_0001>
module attributes {stable_mosaic.version = 11 : i64} {
  func.func @kernel(%arg0: i32, %arg1: memref<1x8x32xf32, #tpu.memory_space<vmem>>, %arg2: memref<1x8x32xf32, #tpu.memory_space<vmem>>, %arg3: memref<1x1x8x8xf32, #tpu.memory_space<vmem>>, %arg4: memref<32x32xbf16, #tpu.memory_space<vmem>>, %arg5: memref<1x32xf32, #tpu.memory_space<vmem>>, %arg6: memref<32x32xbf16, #tpu.memory_space<vmem>>, %arg7: memref<1x32xf32, #tpu.memory_space<vmem>>, %arg8: memref<32x32xbf16, #tpu.memory_space<vmem>>, %arg9: memref<1x32xf32, #tpu.memory_space<vmem>>, %arg10: memref<32x32xbf16, #tpu.memory_space<vmem>>, %arg11: memref<1x32xf32, #tpu.memory_space<vmem>>, %arg12: memref<32x32xbf16, #tpu.memory_space<vmem>>, %arg13: memref<32x32xbf16, #tpu.memory_space<vmem>>, %arg14: memref<1x32xf32, #tpu.memory_space<vmem>>, %arg15: memref<32x32xbf16, #tpu.memory_space<vmem>>, %arg16: memref<32x32xbf16, #tpu.memory_space<vmem>>, %arg17: memref<1x32xf32, #tpu.memory_space<vmem>>, %arg18: memref<1x32xf32, #tpu.memory_space<vmem>>, %arg19: memref<1x32xf32, #tpu.memory_space<vmem>>, %arg20: memref<1x8x32xf32, #tpu.memory_space<vmem>>) attributes {dimension_semantics = [#tpu.dimension_semantics<parallel>], iteration_bounds = array<i64: 2>, scalar_prefetch = 0 : i64, scratch_operands = 0 : i64, tpu.core_type = #tpu.core_type<tc>, window_params = [{transform_indices = @transform_0, window_bounds = array<i64: 1, 8, 32>}, {transform_indices = @transform_1, window_bounds = array<i64: 1, 8, 32>}, {transform_indices = @transform_2, window_bounds = array<i64: 1, 1, 8, 8>}, {pipeline_mode = #tpu.pipeline_mode<synchronous>, transform_indices = @transform_3, window_bounds = array<i64: 32, 32>}, {pipeline_mode = #tpu.pipeline_mode<synchronous>, transform_indices = @transform_4, window_bounds = array<i64: 1, 32>}, {pipeline_mode = #tpu.pipeline_mode<synchronous>, transform_indices = @transform_5, window_bounds = array<i64: 32, 32>}, {pipeline_mode = #tpu.pipeline_mode<synchronous>, transform_indices = @transform_6, window_bounds = array<i64: 1, 32>}, {pipeline_mode = #tpu.pipeline_mode<synchronous>, transform_indices = @transform_7, window_bounds = array<i64: 32, 32>}, {pipeline_mode = #tpu.pipeline_mode<synchronous>, transform_indices = @transform_8, window_bounds = array<i64: 1, 32>}, {pipeline_mode = #tpu.pipeline_mode<synchronous>, transform_indices = @transform_9, window_bounds = array<i64: 32, 32>}, {pipeline_mode = #tpu.pipeline_mode<synchronous>, transform_indices = @transform_10, window_bounds = array<i64: 1, 32>}, {pipeline_mode = #tpu.pipeline_mode<synchronous>, transform_indices = @transform_11, window_bounds = array<i64: 32, 32>}, {pipeline_mode = #tpu.pipeline_mode<synchronous>, transform_indices = @transform_12, window_bounds = array<i64: 32, 32>}, {pipeline_mode = #tpu.pipeline_mode<synchronous>, transform_indices = @transform_13, window_bounds = array<i64: 1, 32>}, {pipeline_mode = #tpu.pipeline_mode<synchronous>, transform_indices = @transform_14, window_bounds = array<i64: 32, 32>}, {pipeline_mode = #tpu.pipeline_mode<synchronous>, transform_indices = @transform_15, window_bounds = array<i64: 32, 32>}, {pipeline_mode = #tpu.pipeline_mode<synchronous>, transform_indices = @transform_16, window_bounds = array<i64: 1, 32>}, {pipeline_mode = #tpu.pipeline_mode<synchronous>, transform_indices = @transform_17, window_bounds = array<i64: 1, 32>}, {pipeline_mode = #tpu.pipeline_mode<synchronous>, transform_indices = @transform_18, window_bounds = array<i64: 1, 32>}, {transform_indices = @transform_19, window_bounds = array<i64: 1, 8, 32>}]} {
    %c0 = arith.constant 0 : index
    %c0_0 = arith.constant 0 : index
    %c0_1 = arith.constant 0 : index
    %0 = vector.load %arg1[%c0, %c0_0, %c0_1] : memref<1x8x32xf32, #tpu.memory_space<vmem>>, vector<1x8x32xf32>
    %1 = vector.shape_cast %0 : vector<1x8x32xf32> to vector<8x32xf32>
    %c0_2 = arith.constant 0 : index
    %c0_3 = arith.constant 0 : index
    %c0_4 = arith.constant 0 : index
    %2 = vector.load %arg2[%c0_2, %c0_3, %c0_4] : memref<1x8x32xf32, #tpu.memory_space<vmem>>, vector<1x8x32xf32>
    %3 = vector.shape_cast %2 : vector<1x8x32xf32> to vector<8x32xf32>
    %c0_5 = arith.constant 0 : index
    %c0_6 = arith.constant 0 : index
    %c0_7 = arith.constant 0 : index
    %c0_8 = arith.constant 0 : index
    %4 = vector.load %arg3[%c0_5, %c0_6, %c0_7, %c0_8] : memref<1x1x8x8xf32, #tpu.memory_space<vmem>>, vector<1x1x8x8xf32>
    %5 = vector.shape_cast %4 : vector<1x1x8x8xf32> to vector<8x8xf32>
    %c0_9 = arith.constant 0 : index
    %c0_10 = arith.constant 0 : index
    %6 = vector.load %arg4[%c0_9, %c0_10] : memref<32x32xbf16, #tpu.memory_space<vmem>>, vector<32x32xbf16>
    %c0_11 = arith.constant 0 : index
    %c0_12 = arith.constant 0 : index
    %7 = vector.load %arg5[%c0_11, %c0_12] : memref<1x32xf32, #tpu.memory_space<vmem>>, vector<1x32xf32>
    %c0_13 = arith.constant 0 : index
    %c0_14 = arith.constant 0 : index
    %8 = vector.load %arg6[%c0_13, %c0_14] : memref<32x32xbf16, #tpu.memory_space<vmem>>, vector<32x32xbf16>
    %c0_15 = arith.constant 0 : index
    %c0_16 = arith.constant 0 : index
    %9 = vector.load %arg7[%c0_15, %c0_16] : memref<1x32xf32, #tpu.memory_space<vmem>>, vector<1x32xf32>
    %c0_17 = arith.constant 0 : index
    %c0_18 = arith.constant 0 : index
    %10 = vector.load %arg8[%c0_17, %c0_18] : memref<32x32xbf16, #tpu.memory_space<vmem>>, vector<32x32xbf16>
    %c0_19 = arith.constant 0 : index
    %c0_20 = arith.constant 0 : index
    %11 = vector.load %arg9[%c0_19, %c0_20] : memref<1x32xf32, #tpu.memory_space<vmem>>, vector<1x32xf32>
    %c0_21 = arith.constant 0 : index
    %c0_22 = arith.constant 0 : index
    %12 = vector.load %arg10[%c0_21, %c0_22] : memref<32x32xbf16, #tpu.memory_space<vmem>>, vector<32x32xbf16>
    %c0_23 = arith.constant 0 : index
    %c0_24 = arith.constant 0 : index
    %13 = vector.load %arg11[%c0_23, %c0_24] : memref<1x32xf32, #tpu.memory_space<vmem>>, vector<1x32xf32>
    %c0_25 = arith.constant 0 : index
    %c0_26 = arith.constant 0 : index
    %14 = vector.load %arg12[%c0_25, %c0_26] : memref<32x32xbf16, #tpu.memory_space<vmem>>, vector<32x32xbf16>
    %c0_27 = arith.constant 0 : index
    %c0_28 = arith.constant 0 : index
    %15 = vector.load %arg13[%c0_27, %c0_28] : memref<32x32xbf16, #tpu.memory_space<vmem>>, vector<32x32xbf16>
    %c0_29 = arith.constant 0 : index
    %c0_30 = arith.constant 0 : index
    %16 = vector.load %arg14[%c0_29, %c0_30] : memref<1x32xf32, #tpu.memory_space<vmem>>, vector<1x32xf32>
    %c0_31 = arith.constant 0 : index
    %c0_32 = arith.constant 0 : index
    %17 = vector.load %arg15[%c0_31, %c0_32] : memref<32x32xbf16, #tpu.memory_space<vmem>>, vector<32x32xbf16>
    %c0_33 = arith.constant 0 : index
    %c0_34 = arith.constant 0 : index
    %18 = vector.load %arg16[%c0_33, %c0_34] : memref<32x32xbf16, #tpu.memory_space<vmem>>, vector<32x32xbf16>
    %c0_35 = arith.constant 0 : index
    %c0_36 = arith.constant 0 : index
    %19 = vector.load %arg17[%c0_35, %c0_36] : memref<1x32xf32, #tpu.memory_space<vmem>>, vector<1x32xf32>
    %c0_37 = arith.constant 0 : index
    %c0_38 = arith.constant 0 : index
    %20 = vector.load %arg18[%c0_37, %c0_38] : memref<1x32xf32, #tpu.memory_space<vmem>>, vector<1x32xf32>
    %c0_39 = arith.constant 0 : index
    %c0_40 = arith.constant 0 : index
    %21 = vector.load %arg19[%c0_39, %c0_40] : memref<1x32xf32, #tpu.memory_space<vmem>>, vector<1x32xf32>
    %22 = arith.truncf %1 : vector<8x32xf32> to vector<8x32xbf16>
    %23 = arith.truncf %3 : vector<8x32xf32> to vector<8x32xbf16>
    %cst = arith.constant dense<0.000000e+00> : vector<8x32xf32>
    %24 = tpu.matmul %22, %6, %cst {dimension_numbers = #tpu.dot_dimension_numbers<[1], [0], [0], [1], [0, 0, 1, 1], [], []>} : vector<8x32xbf16>, vector<32x32xbf16>, vector<8x32xf32> -> vector<8x32xf32>
    %25 = vector.broadcast %7 : vector<1x32xf32> to vector<8x32xf32>
    %26 = arith.addf %24, %25 : vector<8x32xf32>
    %cst_41 = arith.constant dense<0.000000e+00> : vector<8x32xf32>
    %27 = tpu.matmul %23, %8, %cst_41 {dimension_numbers = #tpu.dot_dimension_numbers<[1], [0], [0], [1], [0, 0, 1, 1], [], []>} : vector<8x32xbf16>, vector<32x32xbf16>, vector<8x32xf32> -> vector<8x32xf32>
    %28 = vector.broadcast %9 : vector<1x32xf32> to vector<8x32xf32>
    %29 = arith.addf %27, %28 : vector<8x32xf32>
    %cst_42 = arith.constant dense<0.000000e+00> : vector<8x32xf32>
    %30 = tpu.matmul %23, %10, %cst_42 {dimension_numbers = #tpu.dot_dimension_numbers<[1], [0], [0], [1], [0, 0, 1, 1], [], []>} : vector<8x32xbf16>, vector<32x32xbf16>, vector<8x32xf32> -> vector<8x32xf32>
    %31 = vector.broadcast %11 : vector<1x32xf32> to vector<8x32xf32>
    %32 = arith.addf %30, %31 : vector<8x32xf32>
    %33 = arith.truncf %26 : vector<8x32xf32> to vector<8x32xbf16>
    %34 = arith.truncf %29 : vector<8x32xf32> to vector<8x32xbf16>
    %35 = arith.truncf %32 : vector<8x32xf32> to vector<8x32xbf16>
    %36 = vector.extract_strided_slice %33 {offsets = [0, 0], sizes = [8, 8], strides = [1, 1]} : vector<8x32xbf16> to vector<8x8xbf16>
    %37 = vector.extract_strided_slice %34 {offsets = [0, 0], sizes = [8, 8], strides = [1, 1]} : vector<8x32xbf16> to vector<8x8xbf16>
    %38 = vector.extract_strided_slice %35 {offsets = [0, 0], sizes = [8, 8], strides = [1, 1]} : vector<8x32xbf16> to vector<8x8xbf16>
    %cst_43 = arith.constant dense<0.000000e+00> : vector<8x8xf32>
    %39 = tpu.matmul %36, %37, %cst_43 {dimension_numbers = #tpu.dot_dimension_numbers<[1], [1], [0], [0], [0, 0, 1, 0], [], []>} : vector<8x8xbf16>, vector<8x8xbf16>, vector<8x8xf32> -> vector<8x8xf32>
    %cst_44 = arith.constant 0.000000e+00 : f32
    %40 = vector.broadcast %cst_44 : f32 to vector<8x8xf32>
    %41 = arith.cmpf oeq, %5, %40 : vector<8x8xf32>
    %cst_45 = arith.constant -1.000000e+10 : f32
    %42 = vector.broadcast %cst_45 : f32 to vector<8x8xf32>
    %43 = arith.select %41, %42, %39 : vector<8x8xi1>, vector<8x8xf32>
    %cst_46 = arith.constant dense<0xFF800000> : vector<8xf32>
    %44 = vector.multi_reduction <maximumf>, %43, %cst_46 [1] : vector<8x8xf32> to vector<8xf32>
    %45 = vector.shape_cast %44 : vector<8xf32> to vector<8x1xf32>
    %46 = vector.broadcast %45 : vector<8x1xf32> to vector<8x8xf32>
    %47 = arith.subf %43, %46 : vector<8x8xf32>
    %48 = math.exp %47 : vector<8x8xf32>
    %cst_47 = arith.constant dense<0.000000e+00> : vector<8xf32>
    %49 = vector.multi_reduction <add>, %48, %cst_47 [1] : vector<8x8xf32> to vector<8xf32>
    %50 = vector.shape_cast %49 : vector<8xf32> to vector<8x1xf32>
    %51 = tpu.reciprocal %50 {approx = true} : vector<8x1xf32> -> vector<8x1xf32>
    %52 = vector.broadcast %51 : vector<8x1xf32> to vector<8x8xf32>
    %53 = arith.mulf %48, %52 : vector<8x8xf32>
    %54 = arith.truncf %53 : vector<8x8xf32> to vector<8x8xbf16>
    %cst_48 = arith.constant dense<0.000000e+00> : vector<8x8xf32>
    %55 = tpu.matmul %54, %38, %cst_48 {dimension_numbers = #tpu.dot_dimension_numbers<[1], [0], [0], [1], [0, 0, 1, 1], [], []>} : vector<8x8xbf16>, vector<8x8xbf16>, vector<8x8xf32> -> vector<8x8xf32>
    %56 = arith.truncf %55 : vector<8x8xf32> to vector<8x8xbf16>
    %57 = vector.extract_strided_slice %12 {offsets = [0, 0], sizes = [8, 32], strides = [1, 1]} : vector<32x32xbf16> to vector<8x32xbf16>
    %cst_49 = arith.constant dense<0.000000e+00> : vector<8x32xf32>
    %58 = tpu.matmul %56, %57, %cst_49 {dimension_numbers = #tpu.dot_dimension_numbers<[1], [0], [0], [1], [0, 0, 1, 1], [], []>} : vector<8x8xbf16>, vector<8x32xbf16>, vector<8x32xf32> -> vector<8x32xf32>
    %59 = vector.extract_strided_slice %33 {offsets = [0, 8], sizes = [8, 8], strides = [1, 1]} : vector<8x32xbf16> to vector<8x8xbf16>
    %60 = vector.extract_strided_slice %34 {offsets = [0, 8], sizes = [8, 8], strides = [1, 1]} : vector<8x32xbf16> to vector<8x8xbf16>
    %61 = vector.extract_strided_slice %35 {offsets = [0, 8], sizes = [8, 8], strides = [1, 1]} : vector<8x32xbf16> to vector<8x8xbf16>
    %cst_50 = arith.constant dense<0.000000e+00> : vector<8x8xf32>
    %62 = tpu.matmul %59, %60, %cst_50 {dimension_numbers = #tpu.dot_dimension_numbers<[1], [1], [0], [0], [0, 0, 1, 0], [], []>} : vector<8x8xbf16>, vector<8x8xbf16>, vector<8x8xf32> -> vector<8x8xf32>
    %cst_51 = arith.constant 0.000000e+00 : f32
    %63 = vector.broadcast %cst_51 : f32 to vector<8x8xf32>
    %64 = arith.cmpf oeq, %5, %63 : vector<8x8xf32>
    %cst_52 = arith.constant -1.000000e+10 : f32
    %65 = vector.broadcast %cst_52 : f32 to vector<8x8xf32>
    %66 = arith.select %64, %65, %62 : vector<8x8xi1>, vector<8x8xf32>
    %cst_53 = arith.constant dense<0xFF800000> : vector<8xf32>
    %67 = vector.multi_reduction <maximumf>, %66, %cst_53 [1] : vector<8x8xf32> to vector<8xf32>
    %68 = vector.shape_cast %67 : vector<8xf32> to vector<8x1xf32>
    %69 = vector.broadcast %68 : vector<8x1xf32> to vector<8x8xf32>
    %70 = arith.subf %66, %69 : vector<8x8xf32>
    %71 = math.exp %70 : vector<8x8xf32>
    %cst_54 = arith.constant dense<0.000000e+00> : vector<8xf32>
    %72 = vector.multi_reduction <add>, %71, %cst_54 [1] : vector<8x8xf32> to vector<8xf32>
    %73 = vector.shape_cast %72 : vector<8xf32> to vector<8x1xf32>
    %74 = tpu.reciprocal %73 {approx = true} : vector<8x1xf32> -> vector<8x1xf32>
    %75 = vector.broadcast %74 : vector<8x1xf32> to vector<8x8xf32>
    %76 = arith.mulf %71, %75 : vector<8x8xf32>
    %77 = arith.truncf %76 : vector<8x8xf32> to vector<8x8xbf16>
    %cst_55 = arith.constant dense<0.000000e+00> : vector<8x8xf32>
    %78 = tpu.matmul %77, %61, %cst_55 {dimension_numbers = #tpu.dot_dimension_numbers<[1], [0], [0], [1], [0, 0, 1, 1], [], []>} : vector<8x8xbf16>, vector<8x8xbf16>, vector<8x8xf32> -> vector<8x8xf32>
    %79 = arith.truncf %78 : vector<8x8xf32> to vector<8x8xbf16>
    %80 = vector.extract_strided_slice %12 {offsets = [8, 0], sizes = [8, 32], strides = [1, 1]} : vector<32x32xbf16> to vector<8x32xbf16>
    %cst_56 = arith.constant dense<0.000000e+00> : vector<8x32xf32>
    %81 = tpu.matmul %79, %80, %cst_56 {dimension_numbers = #tpu.dot_dimension_numbers<[1], [0], [0], [1], [0, 0, 1, 1], [], []>} : vector<8x8xbf16>, vector<8x32xbf16>, vector<8x32xf32> -> vector<8x32xf32>
    %82 = arith.addf %58, %81 : vector<8x32xf32>
    %83 = vector.extract_strided_slice %33 {offsets = [0, 16], sizes = [8, 8], strides = [1, 1]} : vector<8x32xbf16> to vector<8x8xbf16>
    %84 = vector.extract_strided_slice %34 {offsets = [0, 16], sizes = [8, 8], strides = [1, 1]} : vector<8x32xbf16> to vector<8x8xbf16>
    %85 = vector.extract_strided_slice %35 {offsets = [0, 16], sizes = [8, 8], strides = [1, 1]} : vector<8x32xbf16> to vector<8x8xbf16>
    %cst_57 = arith.constant dense<0.000000e+00> : vector<8x8xf32>
    %86 = tpu.matmul %83, %84, %cst_57 {dimension_numbers = #tpu.dot_dimension_numbers<[1], [1], [0], [0], [0, 0, 1, 0], [], []>} : vector<8x8xbf16>, vector<8x8xbf16>, vector<8x8xf32> -> vector<8x8xf32>
    %cst_58 = arith.constant 0.000000e+00 : f32
    %87 = vector.broadcast %cst_58 : f32 to vector<8x8xf32>
    %88 = arith.cmpf oeq, %5, %87 : vector<8x8xf32>
    %cst_59 = arith.constant -1.000000e+10 : f32
    %89 = vector.broadcast %cst_59 : f32 to vector<8x8xf32>
    %90 = arith.select %88, %89, %86 : vector<8x8xi1>, vector<8x8xf32>
    %cst_60 = arith.constant dense<0xFF800000> : vector<8xf32>
    %91 = vector.multi_reduction <maximumf>, %90, %cst_60 [1] : vector<8x8xf32> to vector<8xf32>
    %92 = vector.shape_cast %91 : vector<8xf32> to vector<8x1xf32>
    %93 = vector.broadcast %92 : vector<8x1xf32> to vector<8x8xf32>
    %94 = arith.subf %90, %93 : vector<8x8xf32>
    %95 = math.exp %94 : vector<8x8xf32>
    %cst_61 = arith.constant dense<0.000000e+00> : vector<8xf32>
    %96 = vector.multi_reduction <add>, %95, %cst_61 [1] : vector<8x8xf32> to vector<8xf32>
    %97 = vector.shape_cast %96 : vector<8xf32> to vector<8x1xf32>
    %98 = tpu.reciprocal %97 {approx = true} : vector<8x1xf32> -> vector<8x1xf32>
    %99 = vector.broadcast %98 : vector<8x1xf32> to vector<8x8xf32>
    %100 = arith.mulf %95, %99 : vector<8x8xf32>
    %101 = arith.truncf %100 : vector<8x8xf32> to vector<8x8xbf16>
    %cst_62 = arith.constant dense<0.000000e+00> : vector<8x8xf32>
    %102 = tpu.matmul %101, %85, %cst_62 {dimension_numbers = #tpu.dot_dimension_numbers<[1], [0], [0], [1], [0, 0, 1, 1], [], []>} : vector<8x8xbf16>, vector<8x8xbf16>, vector<8x8xf32> -> vector<8x8xf32>
    %103 = arith.truncf %102 : vector<8x8xf32> to vector<8x8xbf16>
    %104 = vector.extract_strided_slice %12 {offsets = [16, 0], sizes = [8, 32], strides = [1, 1]} : vector<32x32xbf16> to vector<8x32xbf16>
    %cst_63 = arith.constant dense<0.000000e+00> : vector<8x32xf32>
    %105 = tpu.matmul %103, %104, %cst_63 {dimension_numbers = #tpu.dot_dimension_numbers<[1], [0], [0], [1], [0, 0, 1, 1], [], []>} : vector<8x8xbf16>, vector<8x32xbf16>, vector<8x32xf32> -> vector<8x32xf32>
    %106 = arith.addf %82, %105 : vector<8x32xf32>
    %107 = vector.extract_strided_slice %33 {offsets = [0, 24], sizes = [8, 8], strides = [1, 1]} : vector<8x32xbf16> to vector<8x8xbf16>
    %108 = vector.extract_strided_slice %34 {offsets = [0, 24], sizes = [8, 8], strides = [1, 1]} : vector<8x32xbf16> to vector<8x8xbf16>
    %109 = vector.extract_strided_slice %35 {offsets = [0, 24], sizes = [8, 8], strides = [1, 1]} : vector<8x32xbf16> to vector<8x8xbf16>
    %cst_64 = arith.constant dense<0.000000e+00> : vector<8x8xf32>
    %110 = tpu.matmul %107, %108, %cst_64 {dimension_numbers = #tpu.dot_dimension_numbers<[1], [1], [0], [0], [0, 0, 1, 0], [], []>} : vector<8x8xbf16>, vector<8x8xbf16>, vector<8x8xf32> -> vector<8x8xf32>
    %cst_65 = arith.constant 0.000000e+00 : f32
    %111 = vector.broadcast %cst_65 : f32 to vector<8x8xf32>
    %112 = arith.cmpf oeq, %5, %111 : vector<8x8xf32>
    %cst_66 = arith.constant -1.000000e+10 : f32
    %113 = vector.broadcast %cst_66 : f32 to vector<8x8xf32>
    %114 = arith.select %112, %113, %110 : vector<8x8xi1>, vector<8x8xf32>
    %cst_67 = arith.constant dense<0xFF800000> : vector<8xf32>
    %115 = vector.multi_reduction <maximumf>, %114, %cst_67 [1] : vector<8x8xf32> to vector<8xf32>
    %116 = vector.shape_cast %115 : vector<8xf32> to vector<8x1xf32>
    %117 = vector.broadcast %116 : vector<8x1xf32> to vector<8x8xf32>
    %118 = arith.subf %114, %117 : vector<8x8xf32>
    %119 = math.exp %118 : vector<8x8xf32>
    %cst_68 = arith.constant dense<0.000000e+00> : vector<8xf32>
    %120 = vector.multi_reduction <add>, %119, %cst_68 [1] : vector<8x8xf32> to vector<8xf32>
    %121 = vector.shape_cast %120 : vector<8xf32> to vector<8x1xf32>
    %122 = tpu.reciprocal %121 {approx = true} : vector<8x1xf32> -> vector<8x1xf32>
    %123 = vector.broadcast %122 : vector<8x1xf32> to vector<8x8xf32>
    %124 = arith.mulf %119, %123 : vector<8x8xf32>
    %125 = arith.truncf %124 : vector<8x8xf32> to vector<8x8xbf16>
    %cst_69 = arith.constant dense<0.000000e+00> : vector<8x8xf32>
    %126 = tpu.matmul %125, %109, %cst_69 {dimension_numbers = #tpu.dot_dimension_numbers<[1], [0], [0], [1], [0, 0, 1, 1], [], []>} : vector<8x8xbf16>, vector<8x8xbf16>, vector<8x8xf32> -> vector<8x8xf32>
    %127 = arith.truncf %126 : vector<8x8xf32> to vector<8x8xbf16>
    %128 = vector.extract_strided_slice %12 {offsets = [24, 0], sizes = [8, 32], strides = [1, 1]} : vector<32x32xbf16> to vector<8x32xbf16>
    %cst_70 = arith.constant dense<0.000000e+00> : vector<8x32xf32>
    %129 = tpu.matmul %127, %128, %cst_70 {dimension_numbers = #tpu.dot_dimension_numbers<[1], [0], [0], [1], [0, 0, 1, 1], [], []>} : vector<8x8xbf16>, vector<8x32xbf16>, vector<8x32xf32> -> vector<8x32xf32>
    %130 = arith.addf %106, %129 : vector<8x32xf32>
    %131 = vector.broadcast %13 : vector<1x32xf32> to vector<8x32xf32>
    %132 = arith.addf %130, %131 : vector<8x32xf32>
    %133 = arith.truncf %132 : vector<8x32xf32> to vector<8x32xbf16>
    %cst_71 = arith.constant dense<0.000000e+00> : vector<8x32xf32>
    %134 = tpu.matmul %133, %14, %cst_71 {dimension_numbers = #tpu.dot_dimension_numbers<[1], [0], [0], [1], [0, 0, 1, 1], [], []>} : vector<8x32xbf16>, vector<32x32xbf16>, vector<8x32xf32> -> vector<8x32xf32>
    %cst_72 = arith.constant dense<0.000000e+00> : vector<8x32xf32>
    %135 = tpu.matmul %22, %15, %cst_72 {dimension_numbers = #tpu.dot_dimension_numbers<[1], [0], [0], [1], [0, 0, 1, 1], [], []>} : vector<8x32xbf16>, vector<32x32xbf16>, vector<8x32xf32> -> vector<8x32xf32>
    %136 = arith.addf %134, %135 : vector<8x32xf32>
    %137 = vector.broadcast %16 : vector<1x32xf32> to vector<8x32xf32>
    %138 = arith.addf %136, %137 : vector<8x32xf32>
    %139 = arith.negf %138 : vector<8x32xf32>
    %140 = math.exp %139 : vector<8x32xf32>
    %cst_73 = arith.constant 1.000000e+00 : f32
    %141 = vector.broadcast %cst_73 : f32 to vector<8x32xf32>
    %142 = arith.addf %141, %140 : vector<8x32xf32>
    %143 = arith.divf %141, %142 : vector<8x32xf32>
    %cst_74 = arith.constant dense<0.000000e+00> : vector<8x32xf32>
    %144 = tpu.matmul %133, %17, %cst_74 {dimension_numbers = #tpu.dot_dimension_numbers<[1], [0], [0], [1], [0, 0, 1, 1], [], []>} : vector<8x32xbf16>, vector<32x32xbf16>, vector<8x32xf32> -> vector<8x32xf32>
    %cst_75 = arith.constant dense<0.000000e+00> : vector<8x32xf32>
    %145 = tpu.matmul %22, %18, %cst_75 {dimension_numbers = #tpu.dot_dimension_numbers<[1], [0], [0], [1], [0, 0, 1, 1], [], []>} : vector<8x32xbf16>, vector<32x32xbf16>, vector<8x32xf32> -> vector<8x32xf32>
    %146 = arith.addf %144, %145 : vector<8x32xf32>
    %147 = vector.broadcast %19 : vector<1x32xf32> to vector<8x32xf32>
    %148 = arith.addf %146, %147 : vector<8x32xf32>
    %149 = arith.mulf %143, %148 : vector<8x32xf32>
    %150 = arith.addf %1, %149 : vector<8x32xf32>
    %cst_76 = arith.constant dense<0.000000e+00> : vector<8xf32>
    %151 = vector.multi_reduction <add>, %150, %cst_76 [1] : vector<8x32xf32> to vector<8xf32>
    %152 = vector.shape_cast %151 : vector<8xf32> to vector<8x1xf32>
    %cst_77 = arith.constant 3.200000e+01 : f32
    %153 = vector.broadcast %cst_77 : f32 to vector<8x1xf32>
    %154 = arith.divf %152, %153 : vector<8x1xf32>
    %155 = vector.broadcast %154 : vector<8x1xf32> to vector<8x32xf32>
    %156 = arith.subf %150, %155 : vector<8x32xf32>
    %157 = arith.mulf %156, %156 : vector<8x32xf32>
    %cst_78 = arith.constant dense<0.000000e+00> : vector<8xf32>
    %158 = vector.multi_reduction <add>, %157, %cst_78 [1] : vector<8x32xf32> to vector<8xf32>
    %159 = vector.shape_cast %158 : vector<8xf32> to vector<8x1xf32>
    %cst_79 = arith.constant 3.200000e+01 : f32
    %160 = vector.broadcast %cst_79 : f32 to vector<8x1xf32>
    %161 = arith.divf %159, %160 : vector<8x1xf32>
    %162 = vector.broadcast %154 : vector<8x1xf32> to vector<8x32xf32>
    %163 = arith.subf %150, %162 : vector<8x32xf32>
    %cst_80 = arith.constant 9.99999974E-6 : f32
    %164 = vector.broadcast %cst_80 : f32 to vector<8x1xf32>
    %165 = arith.addf %161, %164 : vector<8x1xf32>
    %166 = math.rsqrt %165 : vector<8x1xf32>
    %167 = vector.broadcast %166 : vector<8x1xf32> to vector<8x32xf32>
    %168 = arith.mulf %163, %167 : vector<8x32xf32>
    %169 = vector.broadcast %20 : vector<1x32xf32> to vector<8x32xf32>
    %170 = arith.mulf %168, %169 : vector<8x32xf32>
    %171 = vector.broadcast %21 : vector<1x32xf32> to vector<8x32xf32>
    %172 = arith.addf %170, %171 : vector<8x32xf32>
    %c0_81 = arith.constant 0 : index
    %c0_82 = arith.constant 0 : index
    %c0_83 = arith.constant 0 : index
    %173 = vector.load %arg20[%c0_81, %c0_82, %c0_83] : memref<1x8x32xf32, #tpu.memory_space<vmem>>, vector<1x8x32xf32>
    %174 = vector.shape_cast %173 : vector<1x8x32xf32> to vector<8x32xf32>
    %175 = vector.shape_cast %172 : vector<8x32xf32> to vector<1x8x32xf32>
    tpu.vector_store %arg20[%c0_81, %c0_82, %c0_83], %175 {strides = array<i32>} : memref<1x8x32xf32, #tpu.memory_space<vmem>>, vector<1x8x32xf32>,
    return
  }
  func.func @transform_0(%arg0: i32) -> (i32, i32, i32) {
    %c0_i32 = arith.constant 0 : i32
    %c0_i32_0 = arith.constant 0 : i32
    %c0_i32_1 = arith.constant 0 : i32
    return %arg0, %c0_i32, %c0_i32_0 : i32, i32, i32
  }
  func.func @transform_1(%arg0: i32) -> (i32, i32, i32) {
    %c0_i32 = arith.constant 0 : i32
    %c0_i32_0 = arith.constant 0 : i32
    %c0_i32_1 = arith.constant 0 : i32
    return %arg0, %c0_i32, %c0_i32_0 : i32, i32, i32
  }
  func.func @transform_2(%arg0: i32) -> (i32, i32, i32, i32) {
    %c0_i32 = arith.constant 0 : i32
    %c0_i32_0 = arith.constant 0 : i32
    %c0_i32_1 = arith.constant 0 : i32
    %c0_i32_2 = arith.constant 0 : i32
    return %arg0, %c0_i32, %c0_i32_0, %c0_i32_1 : i32, i32, i32, i32
  }
  func.func @transform_3(%arg0: i32) -> (i32, i32) {
    %c0_i32 = arith.constant 0 : i32
    %c0_i32_0 = arith.constant 0 : i32
    %c0_i32_1 = arith.constant 0 : i32
    return %c0_i32, %c0_i32_0 : i32, i32
  }
  func.func @transform_4(%arg0: i32) -> (i32, i32) {
    %c0_i32 = arith.constant 0 : i32
    %c0_i32_0 = arith.constant 0 : i32
    %c0_i32_1 = arith.constant 0 : i32
    return %c0_i32, %c0_i32_0 : i32, i32
  }
  func.func @transform_5(%arg0: i32) -> (i32, i32) {
    %c0_i32 = arith.constant 0 : i32
    %c0_i32_0 = arith.constant 0 : i32
    %c0_i32_1 = arith.constant 0 : i32
    return %c0_i32, %c0_i32_0 : i32, i32
  }
  func.func @transform_6(%arg0: i32) -> (i32, i32) {
    %c0_i32 = arith.constant 0 : i32
    %c0_i32_0 = arith.constant 0 : i32
    %c0_i32_1 = arith.constant 0 : i32
    return %c0_i32, %c0_i32_0 : i32, i32
  }
  func.func @transform_7(%arg0: i32) -> (i32, i32) {
    %c0_i32 = arith.constant 0 : i32
    %c0_i32_0 = arith.constant 0 : i32
    %c0_i32_1 = arith.constant 0 : i32
    return %c0_i32, %c0_i32_0 : i32, i32
  }
  func.func @transform_8(%arg0: i32) -> (i32, i32) {
    %c0_i32 = arith.constant 0 : i32
    %c0_i32_0 = arith.constant 0 : i32
    %c0_i32_1 = arith.constant 0 : i32
    return %c0_i32, %c0_i32_0 : i32, i32
  }
  func.func @transform_9(%arg0: i32) -> (i32, i32) {
    %c0_i32 = arith.constant 0 : i32
    %c0_i32_0 = arith.constant 0 : i32
    %c0_i32_1 = arith.constant 0 : i32
    return %c0_i32, %c0_i32_0 : i32, i32
  }
  func.func @transform_10(%arg0: i32) -> (i32, i32) {
    %c0_i32 = arith.constant 0 : i32
    %c0_i32_0 = arith.constant 0 : i32
    %c0_i32_1 = arith.constant 0 : i32
    return %c0_i32, %c0_i32_0 : i32, i32
  }
  func.func @transform_11(%arg0: i32) -> (i32, i32) {
    %c0_i32 = arith.constant 0 : i32
    %c0_i32_0 = arith.constant 0 : i32
    %c0_i32_1 = arith.constant 0 : i32
    return %c0_i32, %c0_i32_0 : i32, i32
  }
  func.func @transform_12(%arg0: i32) -> (i32, i32) {
    %c0_i32 = arith.constant 0 : i32
    %c0_i32_0 = arith.constant 0 : i32
    %c0_i32_1 = arith.constant 0 : i32
    return %c0_i32, %c0_i32_0 : i32, i32
  }
  func.func @transform_13(%arg0: i32) -> (i32, i32) {
    %c0_i32 = arith.constant 0 : i32
    %c0_i32_0 = arith.constant 0 : i32
    %c0_i32_1 = arith.constant 0 : i32
    return %c0_i32, %c0_i32_0 : i32, i32
  }
  func.func @transform_14(%arg0: i32) -> (i32, i32) {
    %c0_i32 = arith.constant 0 : i32
    %c0_i32_0 = arith.constant 0 : i32
    %c0_i32_1 = arith.constant 0 : i32
    return %c0_i32, %c0_i32_0 : i32, i32
  }
  func.func @transform_15(%arg0: i32) -> (i32, i32) {
    %c0_i32 = arith.constant 0 : i32
    %c0_i32_0 = arith.constant 0 : i32
    %c0_i32_1 = arith.constant 0 : i32
    return %c0_i32, %c0_i32_0 : i32, i32
  }
  func.func @transform_16(%arg0: i32) -> (i32, i32) {
    %c0_i32 = arith.constant 0 : i32
    %c0_i32_0 = arith.constant 0 : i32
    %c0_i32_1 = arith.constant 0 : i32
    return %c0_i32, %c0_i32_0 : i32, i32
  }
  func.func @transform_17(%arg0: i32) -> (i32, i32) {
    %c0_i32 = arith.constant 0 : i32
    %c0_i32_0 = arith.constant 0 : i32
    %c0_i32_1 = arith.constant 0 : i32
    return %c0_i32, %c0_i32_0 : i32, i32
  }
  func.func @transform_18(%arg0: i32) -> (i32, i32) {
    %c0_i32 = arith.constant 0 : i32
    %c0_i32_0 = arith.constant 0 : i32
    %c0_i32_1 = arith.constant 0 : i32
    return %c0_i32, %c0_i32_0 : i32, i32
  }
  func.func @transform_19(%arg0: i32) -> (i32, i32, i32) {
    %c0_i32 = arith.constant 0 : i32
    %c0_i32_0 = arith.constant 0 : i32
    %c0_i32_1 = arith.constant 0 : i32
    return %arg0, %c0_i32, %c0_i32_0 : i32, i32, i32
  }
}

</mosaic_0001>

<bundles_post_ra>
// kernel: tpu_custom_call.1
= control target key start
LH: loop header
LB: loop body
LE: loop exit
PB: predicated region body
PF: predicated region fallthrough
CT: control target
= control target key end

     0   :  { %s3825_s0 = inlined_call_operand.hbm [shape: f32[2,8,32], index: 0, kind: input, shape index: {}]   ;;  %s3826_s1 = inlined_call_operand.hbm [shape: f32[2,8,32], index: 1, kind: input, shape index: {}]   ;;  %s3827_s2 = inlined_call_operand.hbm [shape: f32[2,1,8,8], index: 2, kind: input, shape index: {}]   ;;  %s3828_s3 = inlined_call_operand.hbm [shape: bf16[32,32], index: 3, kind: input, shape index: {}]   ;;  %s3829_s4 = inlined_call_operand.vmem [shape: f32[1,32], index: 4, kind: input, shape index: {}]   ;;  %s3830_s5 = inlined_call_operand.vmem [shape: bf16[32,32], index: 5, kind: input, shape index: {}]   ;;  %s3831_s6 = inlined_call_operand.hbm [shape: f32[1,32], index: 6, kind: input, shape index: {}]   ;;  %s3832_s7 = inlined_call_operand.hbm [shape: bf16[32,32], index: 7, kind: input, shape index: {}]   ;;  %s3833_s8 = inlined_call_operand.hbm [shape: f32[1,32], index: 8, kind: input, shape index: {}]   ;;  %s3834_s9 = inlined_call_operand.vmem [shape: bf16[32,32], index: 9, kind: input, shape index: {}]   ;;  %s3835_s10 = inlined_call_operand.hbm [shape: f32[1,32], index: 10, kind: input, shape index: {}]   ;;  %s3836_s11 = inlined_call_operand.hbm [shape: bf16[32,32], index: 11, kind: input, shape index: {}]   ;;  %s3837_s12 = inlined_call_operand.hbm [shape: bf16[32,32], index: 12, kind: input, shape index: {}]   ;;  %s3838_s13 = inlined_call_operand.hbm [shape: f32[1,32], index: 13, kind: input, shape index: {}]   ;;  %s3839_s14 = inlined_call_operand.vmem [shape: bf16[32,32], index: 14, kind: input, shape index: {}]   ;;  %s3840_s15 = inlined_call_operand.hbm [shape: bf16[32,32], index: 15, kind: input, shape index: {}]   ;;  %s3841_s16 = inlined_call_operand.vmem [shape: f32[1,32], index: 16, kind: input, shape index: {}]   ;;  %s3842_s17 = inlined_call_operand.vmem [shape: f32[1,32], index: 17, kind: input, shape index: {}]   ;;  %s3843_s18 = inlined_call_operand.vmem [shape: f32[1,32], index: 18, kind: input, shape index: {}]   ;;  %s3844_s19 = inlined_call_operand.hbm [shape: f32[2,8,32], index: 19, kind: output, shape index: {}]  }
   0x1   :  { %3877 = sst [smem:[#allocation36_spill]] %s3825_s0 }
   0x2   :  { %3878 = sst [smem:[#allocation37_spill]] %s3826_s1 }
   0x3   :  { %3879 = sst [smem:[#allocation38_spill]] %s3827_s2 }
   0x4   :  { %3880 = sst [smem:[#allocation39_spill]] %s3828_s3 }
   0x5   :  { %3881 = sst [smem:[#allocation40_spill]] %s3829_s4 }
   0x6   :  { %3882 = sst [smem:[#allocation41_spill]] %s3830_s5 }
   0x7   :  { %3883 = sst [smem:[#allocation42_spill]] %s3831_s6 }
   0x8   :  { %3884 = sst [smem:[#allocation43_spill]] %s3832_s7 }
   0x9   :  { %3885 = sst [smem:[#allocation44_spill]] %s3833_s8 }
   0xa   :  { %3886 = sst [smem:[#allocation45_spill]] %s3834_s9 }
   0xb   :  { %3887 = sst [smem:[#allocation46_spill]] %s3835_s10 }
   0xc   :  { %3888 = sst [smem:[#allocation47_spill]] %s3837_s12 }
   0xd   :  { %3889 = sst [smem:[#allocation48_spill]] %s3839_s14 }
   0xe   :  { %3890 = sst [smem:[#allocation49_spill]] %s3841_s16 }
   0xf   :  { %3891 = sst [smem:[#allocation50_spill]] %s3842_s17 }
  0x10   :  { %3892 = sst [smem:[#allocation51_spill]] %s3843_s18 }
  0x11   :  { %3893 = sst [smem:[#allocation52_spill]] %s3844_s19 }
  0x12   :  { %24 = vsyncpa [#allocation3], 0 }
  0x13   :  { %26 = vsyncpa [#allocation3 + $0x1], 0 }
  0x14   :  { %27 = vsyncpa [#allocation6], 0 }
  0x15   :  { %29 = vsyncpa [#allocation6 + $0x1], 0 }
  0x16   :  { %30 = vsyncpa [#allocation9], 0 }
  0x17   :  { %31 = vsyncpa [#allocation12], 0 }
  0x18   :  { %32 = vsyncpa [#allocation15], 0 }
  0x19   :  { %33 = vsyncpa [#allocation18], 0 }
  0x1a   :  { %34 = vsyncpa [#allocation21], 0 }
  0x1b   :  { %35 = vsyncpa [#allocation4], 0 }
  0x1c   :  { %37 = vsyncpa [#allocation4 + $0x1], 0  ;;  %s3154_s0 = smov 0   ;;  %s3156_s30 = smov 0  }
  0x1d   :  { %s3158_s20 = smov 0   ;;  %s3160_s21 = smov 0  }
  0x1e LB: > { %3894 = sst [smem:[#allocation31_spill]] %s3020_s0  ;;  %s3034_s1 = smov [#allocation8]   ;;  %s3032_s21 = sphi %s3160_s21, %s3953_s21   ;;  %s3028_s20 = sphi %s3158_s20, %s3957_s20   ;;  %s3024_s30 = sphi %s3156_s30, %s3956_s30   ;;  %s3020_s0 = sphi %s3154_s0, %s3955_s0  }
  0x1f   : > { %3895 = sst [smem:[#allocation32_spill]] %s3032_s21  ;;  %s500_s22 = sshll.u32 %s3034_s1, 4  ;;  %s3180_s22 = int_to_ptr.vmem [resolvable:$true] %s500_s22 }
  0x20   : > { %s3175_s2 = sadd.s32 4294967295, %s3032_s21   ;;  %p2160_p0 = scmp.ge.s32.totalorder %s3032_s21, 1 }
  0x21   : > { %p3853_p1 = scmp.eq.s32.totalorder %s3175_s2, 0  ;;  %p488_p2 = scmp.lt.s32.totalorder %s3032_s21, 3 }
  0x22   : > { %s3035_s24 = smov [#allocation11]   ;;  %s3036_s26 = smov [#allocation14]  }
  0x23   : > { %p3182_p3 = pnand %p2160_p0, %p488_p2  ;;  %s530_s25 = sshll.u32 %s3035_s24, 4  ;;  %s3195_s25 = int_to_ptr.vmem [resolvable:$true] %s530_s25 }
  0x24   : > { %s558_s27 = sshll.u32 %s3036_s26, 4  ;;  %s3898_s1 = sld [smem:[#allocation39_spill]]  ;;  %s3197_s27 = int_to_ptr.vmem [resolvable:$true] %s558_s27 }
  0x25   : > { %s3896_s23 = scalar_select %p3182_p3, 1, 0 }
  0x26   : > { %p2454_p5 = pneg %p3182_p3 }
  0x28   : > { %p3191_p6 = pnand %p2454_p5, %p3853_p1 }
  0x2a   : > { %s3897_s3 = scalar_select %p3191_p6, 1, 0 }
  0x2b   : > { %s2600_s19 = scalar_lea.hbm %s3898_s1, 256  ;;  %p3207_p8 = pneg %p3191_p6 }
  0x2c   : > { %p2601_p7 = scmp.ne.s32.totalorder %s3898_s1, %s2600_s19  ;;  %p2607_p11 = scmp.lt.u32.totalorder %s2600_s19, %s3898_s1 }
  0x2d   : > { %s3899_s24 = scalar_select %p3207_p8, 1, 0 }
  0x2e   : > { %p2603_p9 = pnand %p3207_p8, %p2601_p7 }
  0x30   : > { %p2604_p10 = pneg %p2603_p9 }
  0x32   : > { %p2609_p12 = pnand %p2607_p11, %p2604_p10 }
  0x34   : > { %2612 = shalt.err (!%p2609_p12)
}
  0x35   : > { %s2613_s17 = scalar_lea.vmem %s3180_s22, 256  ;;  %p2621_p5 = scmp.lt.s32.totalorder %s3180_s22, %s3180_s22 }
  0x36   : > { %p2614_p13 = scmp.ne.s32.totalorder %s3180_s22, %s2613_s17  ;;  %p2622_p4 = scmp.lt.s32.totalorder %s2613_s17, %s2613_s17 }
  0x38   : > { %p2616_p0 = pnand %p2614_p13, %p3207_p8  ;;  %p2623_p7 = por %p2622_p4, %p2621_p5 }
  0x3a   : > { %p2617_p2 = pneg %p2616_p0 }
  0x3c   : > { %p2624_p9 = pnand %p2623_p7, %p2617_p2 }
  0x3e   : > { %2627 = shalt.err (!%p2624_p9)
}
  0x3f   : > { %s3855_s18 = smov 64   ;;  %s3857_s16 = smov 4  }
  0x40   : > { %2457 = dma.hbm_to_vmem [thread:$0]  (!%p3191_p6), %s3898_s1, 256, %s3180_s22, [#allocation9], %s3855_s18, %s3855_s18, %s3857_s16  }
  0x41   : > { %s3900_s7 = sld [smem:[#allocation43_spill]] }
  0x47   : > { %s2628_s17 = scalar_lea.hbm %s3900_s7, 256 }
  0x48   : > { %p2629_p4 = scmp.ne.s32.totalorder %s3900_s7, %s2628_s17  ;;  %p2635_p12 = scmp.lt.u32.totalorder %s2628_s17, %s3900_s7 }
  0x4a   : > { %p2631_p10 = pnand %p2629_p4, %p3207_p8 }
  0x4c   : > { %p2632_p11 = pneg %p2631_p10 }
  0x4e   : > { %p2637_p13 = pnand %p2635_p12, %p2632_p11 }
  0x50   : > { %2640 = shalt.err (!%p2637_p13)
}
  0x51   : > { %s2641_s22 = scalar_lea.vmem %s3195_s25, 256  ;;  %p2649_p7 = scmp.lt.s32.totalorder %s3195_s25, %s3195_s25 }
  0x52   : > { %p2642_p0 = scmp.ne.s32.totalorder %s3195_s25, %s2641_s22  ;;  %p2650_p9 = scmp.lt.s32.totalorder %s2641_s22, %s2641_s22 }
  0x54   : > { %p2644_p2 = pnand %p2642_p0, %p3207_p8  ;;  %p2651_p4 = por %p2650_p9, %p2649_p7 }
  0x56   : > { %p2645_p5 = pneg %p2644_p2 }
  0x58   : > { %p2652_p10 = pnand %p2651_p4, %p2645_p5 }
  0x5a   : > { %2655 = shalt.err (!%p2652_p10)
}
  0x5b   : > { %2463 = dma.hbm_to_vmem [thread:$0]  (!%p3191_p6), %s3900_s7, 256, %s3195_s25, [#allocation12], %s3855_s18, %s3855_s18, %s3857_s16  }
  0x5c   : > { %s3901_s10 = sld [smem:[#allocation46_spill]] }
  0x62   : > { %s2656_s19 = scalar_lea.hbm %s3901_s10, 16 }
  0x63   : > { %p2657_p11 = scmp.ne.s32.totalorder %s3901_s10, %s2656_s19  ;;  %p2663_p0 = scmp.lt.u32.totalorder %s2656_s19, %s3901_s10 }
  0x65   : > { %p2659_p12 = pnand %p2657_p11, %p3207_p8 }
  0x67   : > { %p2660_p13 = pneg %p2659_p12 }
  0x69   : > { %p2665_p2 = pnand %p2663_p0, %p2660_p13 }
  0x6b   : > { %2668 = shalt.err (!%p2665_p2)
}
  0x6c   : > { %s2669_s25 = scalar_lea.vmem %s3197_s27, 16  ;;  %s2676_s22 = scalar_lea.vmem %s3197_s27, 32 }
  0x6d   : > { %p2670_p5 = scmp.ne.s32.totalorder %s3197_s27, %s2669_s25  ;;  %p2677_p4 = scmp.lt.s32.totalorder %s3197_s27, %s3197_s27 }
  0x6e   : > { %p2678_p10 = scmp.lt.s32.totalorder %s2676_s22, %s2669_s25 }
  0x6f   : > { %p2672_p7 = pnand %p2670_p5, %p3207_p8 }
  0x70   : > { %p2679_p11 = por %p2678_p10, %p2677_p4 }
  0x71   : > { %p2673_p9 = pneg %p2672_p7 }
  0x73   : > { %p2680_p12 = pnand %p2679_p11, %p2673_p9 }
  0x75   : > { %2683 = shalt.err (!%p2680_p12)
}
  0x76   : > { %2469 = dma.hbm_to_vmem [thread:$0]  (!%p3191_p6), %s3901_s10, 16, %s3197_s27, [#allocation15]  }
  0x77   : > { %s3039_s9 = smov [#allocation17]   ;;  %s3902_s12 = sld [smem:[#allocation47_spill]] }
  0x78   : > { %s581_s14 = sshll.u32 %s3039_s9, 4  ;;  %s582_s14 = int_to_ptr.vmem [resolvable:$true] %s581_s14 }
  0x7d   : > { %s2684_s29 = scalar_lea.hbm %s3902_s12, 256 }
  0x7e   : > { %p2685_p13 = scmp.ne.s32.totalorder %s3902_s12, %s2684_s29  ;;  %p2691_p5 = scmp.lt.u32.totalorder %s2684_s29, %s3902_s12 }
  0x80   : > { %p2687_p0 = pnand %p2685_p13, %p3207_p8 }
  0x82   : > { %p2688_p2 = pneg %p2687_p0 }
  0x84   : > { %p2693_p7 = pnand %p2691_p5, %p2688_p2 }
  0x86   : > { %2696 = shalt.err (!%p2693_p7)
}
  0x87   : > { %s2697_s27 = scalar_lea.vmem %s582_s14, 256  ;;  %p2705_p11 = scmp.lt.s32.totalorder %s582_s14, %s582_s14 }
  0x88   : > { %p2698_p9 = scmp.ne.s32.totalorder %s582_s14, %s2697_s27  ;;  %p2706_p12 = scmp.lt.s32.totalorder %s2697_s27, %s2697_s27 }
  0x8a   : > { %p2700_p4 = pnand %p2698_p9, %p3207_p8  ;;  %p2707_p1 = por %p2706_p12, %p2705_p11 }
  0x8c   : > { %p2701_p10 = pneg %p2700_p4 }
  0x8e   : > { %p2708_p3 = pnand %p2707_p1, %p2701_p10 }
  0x90   : > { %2711 = shalt.err (!%p2708_p3)
}
  0x91   : > { %2475 = dma.hbm_to_vmem [thread:$0]  (!%p3191_p6), %s3902_s12, 256, %s582_s14, [#allocation18], %s3855_s18, %s3855_s18, %s3857_s16  }
  0x92   : > { %s2159_s9 = sadd.s32 4294967294, %s3032_s21   ;;  %s3304_s19 = sadd.s32 1, %s3032_s21  }
  0x93   : > { %3903 = sst [smem:[#allocation33_spill]] %s3304_s19  ;;  %s47_s28 = ssub.s32 %s3032_s21, %s3304_s19 }
  0x94   : > { %s50_s29 = sadd.s32 1, %s3028_s20  ;;  %p48_p1 = scmp.eq.s32.totalorder %s47_s28, 0 }
  0x95   : > { %p57_p3 = scmp.ne.s32.totalorder %s3028_s20, %s3024_s30  ;;  %p58_p13 = scmp.eq.s32.totalorder %s3032_s21, 0 }
  0x96   : > { %p63_p0 = scmp.ne.s32.totalorder %s3024_s30, %s3020_s0  ;;  %p3905_p5 = scmp.eq.s32.totalorder %s3175_s2, 0 }
  0x97   : > { %s3315_s26 = scalar_select %p48_p1, %s3028_s20, %s50_s29  }
  0x98   : > { %p59_p2 = por %p58_p13, %p57_p3  ;;  %p3319_p7 = por %p3905_p5, %p63_p0 }
  0x99   : > { %3904 = sst [smem:[#allocation34_spill]] %s3315_s26  ;;  %p475_p9 = scmp.eq.s32.totalorder %s3175_s2, 1 }
  0x9a   : > { %s3906_s17 = scalar_select %p3319_p7, 1, 0 }
  0x9b   : > { %p481_p4 = scmp.eq.s32.totalorder %s2159_s9, 1  ;;  %p2505_p10 = scmp.lt.s32.totalorder %s3032_s21, 2 }
  0x9c   : > { %s3859_s14 = sand.u32 1, %s3028_s20   ;;  %p3326_p11 = por %p475_p9, %p57_p3 }
  0x9d   : > { %p3330_p12 = por %p481_p4, %p63_p0  ;;  %s3336_s27 = sshll.u32 %s3859_s14, 3 }
  0x9e   : > { %s3907_s25 = scalar_select %p3326_p11, 1, 0 }
  0x9f   : > { %s3908_s22 = scalar_select %p3330_p12, 1, 0 }
  0xa0   : > { %s3339_s4 = sshll.u32 %s3032_s21, 7  ;;  %p3341_p1 = pnand %p2505_p10, %p59_p2 }
  0xa1   : > { %3909 = sst [smem:[#allocation35_spill]] %s3908_s22  ;;  %s649_s9 = sand.u32 1, %s3032_s21  }
  0xa2   : > { %s3910_s5 = scalar_select %p3341_p1, 1, 0 }
  0xa3   : > { %s3911_s18 = sld [smem:[#allocation37_spill]]  ;;  %s653_s14 = scalar_lea.vmem [#allocation5], %s3336_s27 }
  0xa4   : > { %s660_s1 = sshll.u32 %s653_s14, 4  ;;  %s3040_s7 = smov [#allocation10]   ;;  %s3353_s1 = int_to_ptr.vmem [resolvable:$true] %s660_s1 }
  0xa5   : > { %s3355_s10 = sshll.u32 %s3040_s7, 4  ;;  %s3357_s12 = scalar_lea.sflag [#allocation6], %s649_s9  ;;  %s521_s10 = int_to_ptr.vmem [resolvable:$true] %s3355_s10 }
  0xa6   : > { %p3363_p13 = pneg %p3341_p1 }
  0xa8   : > { %s3912_s28 = scalar_select %p3363_p13, 1, 0 }
  0xa9   : > { %s3350_s16 = scalar_lea.hbm %s3911_s18, %s3339_s4  ;;  %s2717_s19 = scalar_lea.hbm %s3911_s18, 256 }
  0xaa   : > { %s2712_s26 = scalar_lea.hbm %s3350_s16, 128  ;;  %p2718_p5 = scmp.lt.u32.totalorder %s3350_s16, %s3911_s18 }
  0xab   : > { %p2713_p3 = scmp.ne.s32.totalorder %s3350_s16, %s2712_s26  ;;  %p2719_p9 = scmp.lt.u32.totalorder %s2717_s19, %s2712_s26 }
  0xac   : > { %p2721_p10 = scmp.lt.u32.totalorder %s2712_s26, %s3350_s16 }
  0xad   : > { %p2715_p0 = pnand %p3363_p13, %p2713_p3  ;;  %p2720_p4 = por %p2719_p9, %p2718_p5 }
  0xaf   : > { %p2716_p2 = pneg %p2715_p0  ;;  %p2722_p12 = por %p2721_p10, %p2720_p4 }
  0xb1   : > { %p2723_p11 = pnand %p2722_p12, %p2716_p2 }
  0xb3   : > { %2726 = shalt.err (!%p2723_p11)
}
  0xb4   : > { %s2727_s9 = scalar_lea.vmem %s3353_s1, 128  ;;  %s3041_s29 = smov [#allocation5]  }
  0xb5   : > { %p2728_p3 = scmp.ne.s32.totalorder %s3353_s1, %s2727_s9  ;;  %s2732_s14 = sshll.u32 %s3041_s29, 4  ;;  %s2733_s14 = int_to_ptr.vmem [resolvable:$false] %s2732_s14 }
  0xb6   : > { %s2734_s21 = scalar_lea.vmem %s2733_s14, 256  ;;  %p2735_p6 = scmp.lt.s32.totalorder %s3353_s1, %s2733_s14 }
  0xb7   : > { %p2730_p0 = pnand %p2728_p3, %p3363_p13  ;;  %p2736_p8 = scmp.lt.s32.totalorder %s2734_s21, %s2727_s9 }
  0xb9   : > { %p2731_p7 = pneg %p2730_p0  ;;  %p2737_p5 = por %p2736_p8, %p2735_p6 }
  0xbb   : > { %p2738_p9 = pnand %p2737_p5, %p2731_p7 }
  0xbd   : > { %2741 = shalt.err (!%p2738_p9)
}
  0xbe   : > { %2488 = dma.hbm_to_vmem [thread:$0]  (!%p3341_p1), %s3350_s16, 128, %s3353_s1, %s3357_s12  }
  0xbf   : > { %s3913_s6 = sld [smem:[#allocation42_spill]]  ;;  %p3914_p6 = scmp.ne.s32.totalorder %s3899_s24, 0 }
  0xc5   : > { %s2742_s7 = scalar_lea.hbm %s3913_s6, 16 }
  0xc6   : > { %p2743_p11 = scmp.ne.s32.totalorder %s3913_s6, %s2742_s7  ;;  %p2749_p12 = scmp.lt.u32.totalorder %s2742_s7, %s3913_s6 }
  0xc8   : > { %p2745_p8 = pnand %p2743_p11, %p3914_p6 }
  0xca   : > { %p2746_p7 = pneg %p2745_p8 }
  0xcc   : > { %p2751_p2 = pnand %p2749_p12, %p2746_p7 }
  0xce   : > { %2754 = shalt.err (!%p2751_p2)
}
  0xcf   : > { %s2755_s21 = scalar_lea.vmem %s521_s10, 16  ;;  %s2762_s1 = scalar_lea.vmem %s521_s10, 32 }
  0xd0   : > { %p2756_p4 = scmp.ne.s32.totalorder %s521_s10, %s2755_s21  ;;  %p2763_p0 = scmp.lt.s32.totalorder %s521_s10, %s521_s10 }
  0xd1   : > { %p2764_p5 = scmp.lt.s32.totalorder %s2762_s1, %s2755_s21 }
  0xd2   : > { %p2758_p10 = pnand %p2756_p4, %p3914_p6 }
  0xd3   : > { %p2765_p9 = por %p2764_p5, %p2763_p0 }
  0xd4   : > { %p2759_p3 = pneg %p2758_p10 }
  0xd6   : > { %p2766_p1 = pnand %p2765_p9, %p2759_p3 }
  0xd8   : > { %2769 = shalt.err (!%p2766_p1)
}
  0xd9   : > { %p3915_p11 = scmp.ne.s32.totalorder %s3897_s3, 0  ;;  %s3042_s19 = smov [#allocation13]  }
  0xda   : > { %s544_s26 = sshll.u32 %s3042_s19, 4  ;;  %s3043_s7 = smov [#allocation16]   ;;  %s545_s26 = int_to_ptr.vmem [resolvable:$true] %s544_s26 }
  0xdb   : > { %2460 = dma.hbm_to_vmem [thread:$0]  (!%p3915_p11), %s3913_s6, 16, %s521_s10, [#allocation9]  }
  0xdc   : > { %s568_s29 = sshll.u32 %s3043_s7, 4  ;;  %s3916_s8 = sld [smem:[#allocation44_spill]]  ;;  %s569_s29 = int_to_ptr.vmem [resolvable:$true] %s568_s29 }
  0xe2   : > { %s2770_s22 = scalar_lea.hbm %s3916_s8, 16 }
  0xe3   : > { %p2771_p1 = scmp.ne.s32.totalorder %s3916_s8, %s2770_s22  ;;  %p2777_p12 = scmp.lt.u32.totalorder %s2770_s22, %s3916_s8 }
  0xe5   : > { %p2773_p8 = pnand %p2771_p1, %p3914_p6 }
  0xe7   : > { %p2774_p7 = pneg %p2773_p8 }
  0xe9   : > { %p2779_p2 = pnand %p2777_p12, %p2774_p7 }
  0xeb   : > { %2782 = shalt.err (!%p2779_p2)
}
  0xec   : > { %s2783_s10 = scalar_lea.vmem %s545_s26, 16  ;;  %s2790_s16 = scalar_lea.vmem %s545_s26, 32 }
  0xed   : > { %p2784_p4 = scmp.ne.s32.totalorder %s545_s26, %s2783_s10  ;;  %p2791_p0 = scmp.lt.s32.totalorder %s545_s26, %s545_s26 }
  0xee   : > { %p2792_p5 = scmp.lt.s32.totalorder %s2790_s16, %s2783_s10 }
  0xef   : > { %p2786_p10 = pnand %p2784_p4, %p3914_p6 }
  0xf0   : > { %p2793_p9 = por %p2792_p5, %p2791_p0 }
  0xf1   : > { %p2787_p3 = pneg %p2786_p10 }
  0xf3   : > { %p2794_p13 = pnand %p2793_p9, %p2787_p3 }
  0xf5   : > { %2797 = shalt.err (!%p2794_p13)
}
  0xf6   : > { %2466 = dma.hbm_to_vmem [thread:$0]  (!%p3915_p11), %s3916_s8, 16, %s545_s26, [#allocation12]  }
  0xf7   : > { %s2798_s9 = scalar_lea.hbm %s3836_s11, 256 }
  0xf8   : > { %p2799_p1 = scmp.ne.s32.totalorder %s3836_s11, %s2798_s9  ;;  %p2805_p13 = scmp.lt.u32.totalorder %s2798_s9, %s3836_s11 }
  0xfa   : > { %p2801_p8 = pnand %p2799_p1, %p3914_p6 }
  0xfc   : > { %p2802_p7 = pneg %p2801_p8 }
  0xfe   : > { %p2807_p12 = pnand %p2805_p13, %p2802_p7 }
 0x100   : > { %2810 = shalt.err (!%p2807_p12)
}
 0x101   : > { %s2811_s10 = scalar_lea.vmem %s569_s29, 256  ;;  %p2819_p3 = scmp.lt.s32.totalorder %s569_s29, %s569_s29 }
 0x102   : > { %p2812_p2 = scmp.ne.s32.totalorder %s569_s29, %s2811_s10  ;;  %p2820_p0 = scmp.lt.s32.totalorder %s2811_s10, %s2811_s10 }
 0x104   : > { %p2814_p4 = pnand %p2812_p2, %p3914_p6  ;;  %p2821_p5 = por %p2820_p0, %p2819_p3 }
 0x106   : > { %p2815_p10 = pneg %p2814_p4 }
 0x108   : > { %p2822_p9 = pnand %p2821_p5, %p2815_p10 }
 0x10a   : > { %2825 = shalt.err (!%p2822_p9)
}
 0x10b   : > { %s3917_s26 = smov 4   ;;  %s3918_s16 = smov 64  }
 0x10c   : > { %2472 = dma.hbm_to_vmem [thread:$0]  (!%p3915_p11), %s3836_s11, 256, %s569_s29, [#allocation15], %s3918_s16, %s3918_s16, %s3917_s26  }
 0x10d   : > { %s3044_s0 = smov [#allocation19]   ;;  %s3045_s9 = smov [#allocation20]  }
 0x10e   : > { %s595_s22 = sshll.u32 %s3044_s0, 4  ;;  %s608_s14 = sshll.u32 %s3045_s9, 4  ;;  %s596_s22 = int_to_ptr.vmem [resolvable:$true] %s595_s22  ;;  %s609_s14 = int_to_ptr.vmem [resolvable:$true] %s608_s14 }
 0x10f   : > { %s2826_s18 = scalar_lea.hbm %s3838_s13, 16 }
 0x110   : > { %p2827_p1 = scmp.ne.s32.totalorder %s3838_s13, %s2826_s18  ;;  %p2833_p13 = scmp.lt.u32.totalorder %s2826_s18, %s3838_s13 }
 0x112   : > { %p2829_p8 = pnand %p2827_p1, %p3914_p6 }
 0x114   : > { %p2830_p7 = pneg %p2829_p8 }
 0x116   : > { %p2835_p12 = pnand %p2833_p13, %p2830_p7 }
 0x118   : > { %2838 = shalt.err (!%p2835_p12)
}
 0x119   : > { %s2839_s29 = scalar_lea.vmem %s596_s22, 16  ;;  %s2846_s7 = scalar_lea.vmem %s596_s22, 32 }
 0x11a   : > { %p2840_p2 = scmp.ne.s32.totalorder %s596_s22, %s2839_s29  ;;  %p2847_p3 = scmp.lt.s32.totalorder %s596_s22, %s596_s22 }
 0x11b   : > { %p2848_p0 = scmp.lt.s32.totalorder %s2846_s7, %s2839_s29 }
 0x11c   : > { %p2842_p4 = pnand %p2840_p2, %p3914_p6 }
 0x11d   : > { %p2849_p5 = por %p2848_p0, %p2847_p3 }
 0x11e   : > { %p2843_p10 = pneg %p2842_p4 }
 0x120   : > { %p2850_p9 = pnand %p2849_p5, %p2843_p10 }
 0x122   : > { %2853 = shalt.err (!%p2850_p9)
}
 0x123   : > { %2478 = dma.hbm_to_vmem [thread:$0]  (!%p3915_p11), %s3838_s13, 16, %s596_s22, [#allocation18]  }
 0x124   : > { %s2854_s21 = scalar_lea.hbm %s3840_s15, 256 }
 0x125   : > { %p2855_p1 = scmp.ne.s32.totalorder %s3840_s15, %s2854_s21  ;;  %p2861_p13 = scmp.lt.u32.totalorder %s2854_s21, %s3840_s15 }
 0x127   : > { %p2857_p8 = pnand %p2855_p1, %p3914_p6 }
 0x129   : > { %p2858_p7 = pneg %p2857_p8 }
 0x12b   : > { %p2863_p12 = pnand %p2861_p13, %p2858_p7 }
 0x12d   : > { %2866 = shalt.err (!%p2863_p12)
}
 0x12e   : > { %s2867_s29 = scalar_lea.vmem %s609_s14, 256  ;;  %p2875_p3 = scmp.lt.s32.totalorder %s609_s14, %s609_s14 }
 0x12f   : > { %p2868_p2 = scmp.ne.s32.totalorder %s609_s14, %s2867_s29  ;;  %p2876_p0 = scmp.lt.s32.totalorder %s2867_s29, %s2867_s29 }
 0x131   : > { %p2870_p4 = pnand %p2868_p2, %p3914_p6  ;;  %p2877_p5 = por %p2876_p0, %p2875_p3 }
 0x133   : > { %p2871_p10 = pneg %p2870_p4 }
 0x135   : > { %p2878_p9 = pnand %p2877_p5, %p2871_p10 }
 0x137   : > { %2881 = shalt.err (!%p2878_p9)
}
 0x138   : > { %2481 = dma.hbm_to_vmem [thread:$0]  (!%p3915_p11), %s3840_s15, 256, %s609_s14, [#allocation21], %s3918_s16, %s3918_s16, %s3917_s26  }
 0x139   : > { %s3919_s0 = sld [smem:[#allocation36_spill]]  ;;  %s635_s3 = scalar_lea.vmem [#allocation2], %s3336_s27 }
 0x13a   : > { %s642_s21 = sshll.u32 %s635_s3, 4  ;;  %s3921_s10 = sld [smem:[#allocation38_spill]]  ;;  %s3491_s21 = int_to_ptr.vmem [resolvable:$true] %s642_s21 }
 0x13b   : > { %s3922_s29 = sand.u32 1, %s3028_s20   ;;  %p3923_p11 = scmp.ne.s32.totalorder %s3912_s28, 0 }
 0x13c   : > { %s632_s26 = scalar_lea.sflag [#allocation3], %s3922_s29 }
 0x13f   : > { %s3920_s8 = smov %s3919_s0  ;;  %s3488_s9 = scalar_lea.hbm %s3919_s0, %s3339_s4 }
 0x140   : > { %s3497_s19 = scalar_lea.hbm %s3921_s10, %s3339_s4  ;;  %s2882_s16 = scalar_lea.hbm %s3488_s9, 128 }
 0x141   : > { %p2883_p6 = scmp.ne.s32.totalorder %s3488_s9, %s2882_s16  ;;  %s2887_s7 = scalar_lea.hbm %s3920_s8, 256 }
 0x142   : > { %p2888_p7 = scmp.lt.u32.totalorder %s3488_s9, %s3920_s8  ;;  %p2889_p13 = scmp.lt.u32.totalorder %s2887_s7, %s2882_s16 }
 0x143   : > { %p2885_p1 = pnand %p2883_p6, %p3923_p11  ;;  %p2891_p2 = scmp.lt.u32.totalorder %s2882_s16, %s3488_s9 }
 0x144   : > { %p2890_p12 = por %p2889_p13, %p2888_p7 }
 0x145   : > { %p2886_p8 = pneg %p2885_p1 }
 0x146   : > { %p2892_p4 = por %p2891_p2, %p2890_p12 }
 0x148   : > { %p2893_p10 = pnand %p2892_p4, %p2886_p8 }
 0x14a   : > { %2896 = shalt.err (!%p2893_p10)
}
 0x14b   : > { %s2897_s4 = scalar_lea.vmem %s3491_s21, 128  ;;  %s3046_s0 = smov [#allocation2]  }
 0x14c   : > { %p2898_p3 = scmp.ne.s32.totalorder %s3491_s21, %s2897_s4  ;;  %s2902_s3 = sshll.u32 %s3046_s0, 4  ;;  %s2903_s3 = int_to_ptr.vmem [resolvable:$false] %s2902_s3 }
 0x14d   : > { %s2904_s1 = scalar_lea.vmem %s2903_s3, 256  ;;  %p2905_p9 = scmp.lt.s32.totalorder %s3491_s21, %s2903_s3 }
 0x14e   : > { %p2900_p0 = pnand %p2898_p3, %p3923_p11  ;;  %p2906_p6 = scmp.lt.s32.totalorder %s2904_s1, %s2897_s4 }
 0x150   : > { %p2901_p5 = pneg %p2900_p0  ;;  %p2907_p1 = por %p2906_p6, %p2905_p9 }
 0x152   : > { %p2908_p7 = pnand %p2907_p1, %p2901_p5 }
 0x154   : > { %2911 = shalt.err (!%p2908_p7)
}
 0x155   : > { %p3924_p8 = scmp.ne.s32.totalorder %s3910_s5, 0  ;;  %s671_s18 = scalar_lea.vmem [#allocation7], %s3336_s27 }
 0x156   : > { %s678_s29 = sshll.u32 %s671_s18, 4  ;;  %s2912_s16 = scalar_lea.hbm %s3497_s19, 128  ;;  %s679_s29 = int_to_ptr.vmem [resolvable:$true] %s678_s29 }
 0x157   : > { %2485 = dma.hbm_to_vmem [thread:$0]  (!%p3924_p8), %s3488_s9, 128, %s3491_s21, %s632_s26  }
 0x158   : > { %p2913_p13 = scmp.ne.s32.totalorder %s3497_s19, %s2912_s16  ;;  %s2917_s7 = scalar_lea.hbm %s3921_s10, 256 }
 0x159   : > { %p2918_p4 = scmp.lt.u32.totalorder %s3497_s19, %s3921_s10  ;;  %p2919_p10 = scmp.lt.u32.totalorder %s2917_s7, %s2912_s16 }
 0x15a   : > { %p2915_p12 = pnand %p2913_p13, %p3923_p11  ;;  %p2921_p0 = scmp.lt.u32.totalorder %s2912_s16, %s3497_s19 }
 0x15b   : > { %p2920_p3 = por %p2919_p10, %p2918_p4 }
 0x15c   : > { %p2916_p2 = pneg %p2915_p12 }
 0x15d   : > { %p2922_p5 = por %p2921_p0, %p2920_p3 }
 0x15f   : > { %p2923_p9 = pnand %p2922_p5, %p2916_p2 }
 0x161   : > { %2926 = shalt.err (!%p2923_p9)
}
 0x162   : > { %s2927_s27 = scalar_lea.vmem %s679_s29, 128  ;;  %s3047_s9 = smov [#allocation7]  }
 0x163   : > { %p2928_p6 = scmp.ne.s32.totalorder %s679_s29, %s2927_s27  ;;  %s2932_s21 = sshll.u32 %s3047_s9, 4  ;;  %s2933_s21 = int_to_ptr.vmem [resolvable:$false] %s2932_s21 }
 0x164   : > { %s2934_s26 = scalar_lea.vmem %s2933_s21, 256  ;;  %p2935_p13 = scmp.lt.s32.totalorder %s679_s29, %s2933_s21 }
 0x165   : > { %p2930_p1 = pnand %p2928_p6, %p3923_p11  ;;  %p2936_p12 = scmp.lt.s32.totalorder %s2934_s26, %s2927_s27 }
 0x167   : > { %p2931_p7 = pneg %p2930_p1  ;;  %p2937_p8 = por %p2936_p12, %p2935_p13 }
 0x169   : > { %p2938_p4 = pnand %p2937_p8, %p2931_p7 }
 0x16b   : > { %2941 = shalt.err (!%p2938_p4)
}
 0x16c   : > { %p3925_p10 = scmp.ne.s32.totalorder %s3910_s5, 0  ;;  %p3926_p2 = scmp.ne.s32.totalorder %s3896_s23, 0 }
 0x16d   : > { %s3544_s28 = sand.u32 (!%p3926_p2), 1, %s3024_s30   ;;  %p3927_p11 = scmp.ne.s32.totalorder (!%p3926_p2), %s3906_s17, 0 }
 0x16e   : > { %2491 = dma.hbm_to_vmem [thread:$0]  (!%p3925_p10), %s3497_s19, 128, %s679_s29, %s3357_s12  }
 0x16f   : > { %687 = sbr.rel (%p3926_p2) target bundleno = 3569 (0xdf1), region = 96  ;;  %s3547_s4 = sshll.u32 (!%p3926_p2), %s3544_s28, 3 }
 0x170   : > { %s690_s0 = scalar_lea.sflag (!%p3926_p2), [#allocation3], %s3544_s28  ;;  %s693_s3 = scalar_lea.vmem (!%p3926_p2), [#allocation2], %s3547_s4 }
 0x176   : > { %2987 = dma.done.wait (%p3927_p11), %s690_s0, 128  }
 0x177   : > { %2989 = vsyncadd (%p3927_p11), %s690_s0, 4294967168  ;;  %s698_s12 = sand.u32 1, %s3175_s2   ;;  %s702_s5 = scalar_lea.vmem [#allocation5], %s3547_s4 }
 0x178   : > { %s699_s23 = scalar_lea.sflag [#allocation6], %s698_s12 }
 0x179   : > { %2991 = dma.done.wait (%p3927_p11), %s699_s23, 256  }
 0x17a   : > { %2993 = vsyncadd (%p3927_p11), %s699_s23, 4294967040  ;;  %s711_s19 = scalar_lea.vmem [#allocation7], %s3547_s4  ;;  %p3928_p8 = scmp.eq.s32.totalorder %s3175_s2, 0 }
 0x17c   : > { %2995 = dma.done.wait (%p3928_p8), [#allocation9], 272   ;;  %p3929_p3 = pmov %p3928_p8 }
 0x17e   : > { %2997 = vsyncadd (%p3929_p3), [#allocation9], 4294967024  ;;  %p3930_p0 = pmov %p3929_p3 }
 0x180   : > { %2999 = dma.done.wait (%p3930_p0), [#allocation12], 272   ;;  %p3931_p5 = pmov %p3930_p0 }
 0x181   : > { %p3932_p9 = pmov %p3930_p0 }
 0x182   : > { %3001 = vsyncadd (%p3931_p5), [#allocation12], 4294967024 }
 0x183   : > { %3003 = dma.done.wait (%p3932_p9), [#allocation15], 272   ;;  %p3933_p6 = pmov %p3930_p0 }
 0x184   : > { %p3934_p1 = pmov %p3930_p0 }
 0x185   : > { %3005 = vsyncadd (%p3933_p6), [#allocation15], 4294967024 }
 0x186   : > { %3007 = dma.done.wait (%p3934_p1), [#allocation18], 272   ;;  %p3935_p7 = pmov %p3930_p0 }
 0x187   : > { %p3936_p13 = pmov %p3930_p0 }
 0x188   : > { %3009 = vsyncadd (%p3935_p7), [#allocation18], 4294967024 }
 0x189   : > { %3011 = dma.done.wait (%p3936_p13), [#allocation21], 256   ;;  %p3937_p12 = pmov %p3930_p0 }
 0x18a   : > { %v3048_v0 = vmov 0.0   ;;  %vm3049_vm0 = vmmov 0   ;;  %s3938_s18 = sld [smem:[#allocation41_spill]]  ;;  %v2566_v3 = vld [vmem:[#allocation8] sm:$0xff]   ;;  %vm876_vm1 = vcmask 261120   ;;  %v2567_v5 = vld [vmem:[#allocation8 + $0x8] sm:$0xff]  }
 0x18b   : > { %3013 = vsyncadd (%p3937_p12), [#allocation21], 4294967040  ;;  %2290 = vmatprep.subr.bf16.mxu1 %v3048_v0  ;;  %2282 = vmatprep.subr.bf16.mxu0 %v3048_v0  ;;  %v814_v4 = vld [vmem:[%s702_s5] sm:$0xff]  ;;  %v3597_v6 = vld [vmem:[%s693_s3] sm:$0xff]  ;;  %s3939_s7 = sld [smem:[#allocation40_spill]]  ;;  %vm1042_vm2 = vcmask 64512  }
 0x18c   : > { %2294 = vmatprep.mubr.msk.bf16.mxu1 %vm3049_vm0, %v3048_v0  ;;  %2286 = vmatprep.mubr.msk.bf16.mxu0 %vm3049_vm0, %v3048_v0  ;;  %v857_v7 = vpack.c.bf16 %v814_v4, %v814_v4  ;;  %v3602_v8 = vpack.c.bf16 %v3597_v6, %v3597_v6  ;;  %v2195_v9 = vld [vmem:[#allocation10] ss:$0 sm:$0xff]  ;;  %s3050_s24 = smov 120   ;;  %v2568_v24 = vld [vmem:[#allocation11] sm:$0xff]   ;;  %v2569_v25 = vld [vmem:[#allocation11 + $0x8] sm:$0xff]   ;;  %s3051_s6 = smov 112  }
 0x18d   : > { %2283 = vmatpush3.bf16.msra.mxu0 %v2566_v3  ;;  %v3643_v29 = vld [vmem:[%s711_s19] sm:$0xff]  ;;  %v2199_v51 = vld [vmem:[#allocation13] ss:$0 sm:$0xff]  ;;  %vm1106_vm4 = vcmask 1043456   ;;  %s3940_s21 = sld [smem:[#allocation45_spill]]  ;;  %s3052_s12 = smov 104  }
 0x18e   : > { %2284 = vmatprep.subr.bf16.mxu0 %v3048_v0  ;;  %vm1089_vm3 = vcmp.eq.f32.partialorder %v3643_v29, 0.0  ;;  %s3942_s16 = sld [smem:[#allocation48_spill]]  ;;  %s2234_s23 = sshll.u32 %s3175_s2, 7 }
 0x18f   : > { %s811_s5 = scalar_lea.vmem [#allocation22], %s3547_s4  ;;  %s3946_s29 = sld [smem:[#allocation52_spill]] }
 0x190   : > { %v2564_v1 = vld [vmem:[%s3938_s18] sm:$0xff]   ;;  %v2565_v2 = vld [vmem:[%s3938_s18 + $0x8] sm:$0xff]   ;;  %s1960_s19 = sshll.u32 %s811_s5, 4  ;;  %s1947_s22 = scalar_lea.sflag [#allocation4], %s3544_s28  ;;  %s3782_s19 = int_to_ptr.vmem [resolvable:$true] %s1960_s19 }
 0x191   : > { %2291 = vmatpush3.bf16.msra.mxu1 %v2564_v1  ;;  %2285 = vmatpush3.bf16.msra.mxu0 %v2567_v5  ;;  %v2191_v11 = vld [vmem:[%s3939_s7] ss:$0 sm:$0xff]  ;;  %s2942_s7 = scalar_lea.vmem %s3782_s19, 128  ;;  %p3947_p10 = scmp.ne.s32.totalorder %s3907_s25, 0 }
 0x192   : > { %2292 = vmatprep.subr.bf16.mxu1 %v3048_v0  ;;  %2298 = vmatprep.subr.bf16.mxu0 %v3048_v0  ;;  %p2943_p4 = scmp.ne.s32.totalorder %s3782_s19, %s2942_s7  ;;  %s3053_s2 = smov [#allocation22]  }
 0x193   : > { %s3941_s26 = smov %s3940_s21  ;;  %v832_v1 = vld [vmem:[%s3940_s21 + $0x4] sm:$0xf]  ;;  %s3944_s21 = sld [smem:[#allocation50_spill]] }
 0x194   : > { %2287 = vmatmul.mubr.msk.bf16.vlgmr.msra.gmra.mrb[0].mxu0 %vm876_vm1, %v3602_v8  ;;  %v834_v29 = vld [vmem:[%s3941_s26 + $0xc] sm:$0xf]  ;;  %p2944_p2 = pnand %p2943_p4, %p3947_p10  ;;  %s2946_s4 = sshll.u32 %s3053_s2, 4  ;;  %s2947_s4 = int_to_ptr.vmem [resolvable:$false] %s2946_s4 }
 0x195   : > { %2293 = vmatpush3.bf16.msra.mxu1 %v2565_v2  ;;  %2302 = vmatprep.mubr.msk.bf16.mxu0 %vm3049_vm0, %v3048_v0  ;;  %v1270_v2 = vsel %vm1106_vm4, %v832_v1, 0  ;;  %s3780_s14 = scalar_lea.hbm %s3946_s29, %s2234_s23  ;;  %p2949_p8 = scmp.lt.s32.totalorder %s3782_s19, %s2947_s4 }
 0x196   : > { %2306 = vmatprep.subr.bf16.mxu1 %v3048_v0  ;;  %2299 = vmatpush3.bf16.msra.mxu0 %v2568_v24  ;;  %p2945_p11 = pneg %p2944_p2 }
 0x197   : > { %2300 = vmatprep.subr.bf16.mxu0 %v3048_v0 }
 0x198   : > { %2295 = vmatmul.mubr.msk.bf16.vlgmr.msra.gmra.mrb[0].mxu1 %vm876_vm1, %v857_v7 }
 0x199   : > { %2308 = vmatprep.mubr.msk.bf16.mxu1 %vm3049_vm0, %v3048_v0 }
 0x19a   : > { %2301 = vmatpush3.bf16.msra.mxu0 %v2569_v25 }
 0x19b   : > { %2312 = vmatprep.subr.bf16.mxu0 %v3048_v0 }
 0x19d   : > { %2303 = vmatmul.mubr.msk.bf16.vlgmr.msra.gmra.mrb[4].mxu0 %vm876_vm1, %v857_v7 }
 0x19e   : > { %2314 = vmatprep.mubr.msk.bf16.mxu0 %vm3049_vm0, %v3048_v0 }
 0x267   : > { %v914_v15 = vpop.f32.mrb[0].mxu0 }
 0x268   : > { %v915_v18 = vadd.f32 %v2191_v11, %v914_v15  ;;  %v2288_v19 = vpop.f32.mrb[1].mxu0 }
 0x269   : > { %v917_v20 = vpop.f32.mrb[2].mxu0 }
 0x26a   : > { %v3620_v21 = vpack.c.bf16 %v915_v18, %v915_v18  ;;  %v2289_v23 = vpop.f32.mrb[3].mxu0 }
 0x26b   : > { %v975_v10 = vpop.f32.mrb[0].mxu1 }
 0x26c   : > { %v976_v12 = vadd.f32 %v2195_v9, %v975_v10  ;;  %v2296_v13 = vpop.f32.mrb[1].mxu1  ;;  %v831_v9 = vld [vmem:[%s3941_s26] sm:$0xf] }
 0x26d   : > { %v978_v14 = vpop.f32.mrb[2].mxu1 }
 0x26e   : > { %v3616_v16 = vpack.c.bf16 %v976_v12, %v976_v12  ;;  %v2297_v17 = vpop.f32.mrb[3].mxu1  ;;  %v1316_v12 = vsel %vm1106_vm4, %v831_v9, 0 }
 0x270   : > { %1155 = vrot.lane.b32.xlu0 %v3616_v16, %s3050_s24  ;;  %v1047_v22 = vsel %vm1042_vm2, %v3616_v16, 0  ;;  %v1033_v45 = vpop.f32.mrb[4].mxu0 }
 0x271   : > { %2307 = vmatpush3.bf16.xpose.msra.mxu1 %v1047_v22  ;;  %v2304_v46 = vpop.f32.mrb[5].mxu0  ;;  %v1034_v52 = vadd.f32 %v2199_v51, %v1033_v45 }
 0x272   : > { %2318 = vmatprep.subr.bf16.mxu1 %v3048_v0  ;;  %v1036_v47 = vpop.f32.mrb[6].mxu0 }
 0x273   : > { %v2305_v48 = vpop.f32.mrb[7].mxu0  ;;  %v3653_v53 = vpack.c.bf16 %v1034_v52, %v1034_v52 }
 0x274   : > { %1152 = vrot.lane.b32.xlu0 %v3620_v21, %s3050_s24 }
 0x275   : > { %v1108_v54 = vsel %vm1106_vm4, %v3653_v53, 0 }
 0x276   : > { %2313 = vmatpush3.bf16.msra.mxu0 %v1108_v54 }
 0x277   : > { %2324 = vmatprep.subr.bf16.mxu0 %v3048_v0 }
 0x278   : > { %2309 = vmatmul.mubr.msk.bf16.vlgmr.msra.gmra.mrb[4].mxu1 %vm1042_vm2, %v3620_v21 }
 0x279   : > { %2320 = vmatprep.mubr.msk.bf16.mxu1 %vm3049_vm0, %v3048_v0 }
 0x2e2   : > { %v1156_v26 = vpop.permute.xlu0 %1155 }
 0x2e3   : > { %v1161_v27 = vsel %vm1042_vm2, %v1156_v26, 0 }
 0x2e4   : > { %2319 = vmatpush3.bf16.xpose.msra.mxu1 %v1161_v27 }
 0x2e5   : > { %2330 = vmatprep.subr.bf16.mxu1 %v3048_v0 }
 0x2e6   : > { %v1153_v28 = vpop.permute.xlu0 %1152 }
 0x2eb   : > { %2321 = vmatmul.mubr.msk.bf16.vlgmr.msra.gmra.mrb[8].mxu1 %vm1042_vm2, %v1153_v28 }
 0x2ec   : > { %2332 = vmatprep.mubr.msk.bf16.mxu1 %vm3049_vm0, %v3048_v0  ;;  %2331 = vmatpush3.bf16.msra.mxu1 %v1270_v2 }
 0x2ed   : > { %2342 = vmatprep.subr.bf16.mxu1 %v3048_v0 }
 0x34b   : > { %v1083_v30 = vpop.f32.mrb[4].mxu1 }
 0x34c   : > { %v1090_v31 = vsel %vm1089_vm3, -1e+10, %v1083_v30  ;;  %v2310_v32 = vpop.f32.mrb[5].mxu1 }
 0x34d   : > { %v1086_v33 = vpop.f32.mrb[6].mxu1  ;;  %v1091_v34 = vsel %vm1042_vm2, %v1090_v31, -inf }
 0x34e   : > { %1092 = vmax.xlane.f32.xlu1 %v1091_v34  ;;  %v2311_v35 = vpop.f32.mrb[7].mxu1 }
 0x3be   : > { %v1197_v36 = vpop.f32.mrb[8].mxu1 }
 0x3bf   : > { %v1203_v37 = vsel %vm1089_vm3, -1e+10, %v1197_v36  ;;  %v2322_v38 = vpop.f32.mrb[9].mxu1 }
 0x3c0   : > { %v1200_v39 = vpop.f32.mrb[10].mxu1  ;;  %v1204_v40 = vsel %vm1042_vm2, %v1203_v37, -inf }
 0x3c1   : > { %1205 = vmax.xlane.f32.xlu1 %v1204_v40  ;;  %v2323_v41 = vpop.f32.mrb[11].mxu1 }
 0x3db   : > { %v1093_v42 = vpop.xlane.xlu1 %1092 }
 0x3dc   : > { %v1094_v43 = vsub.f32 %v1090_v31, %v1093_v42 }
 0x3de   : > { %v1095_v44 = vmul.f32 1.442695, %v1094_v43 }
 0x3e0   : > { %2578 = vpow2.f32 %v1095_v44 }
 0x3ea   : > { %v2579_v49 = vpop.eup %2578 }
 0x3eb   : > { %v1097_v50 = vsel %vm1042_vm2, %v2579_v49, 0.0 }
 0x3ec   : > { %1098 = vadd.xlane.f32.xlu0 %v1097_v50 }
 0x402   : > { %1421 = vrot.lane.b32.xlu0 %v3653_v53, %s3051_s6 }
 0x44e   : > { %v1206_v55 = vpop.xlane.xlu1 %1205 }
 0x44f   : > { %v1207_v56 = vsub.f32 %v1203_v37, %v1206_v55 }
 0x451   : > { %v1208_v57 = vmul.f32 1.442695, %v1207_v56 }
 0x453   : > { %2580 = vpow2.f32 %v1208_v57 }
 0x45d   : > { %v2581_v58 = vpop.eup %2580 }
 0x45e   : > { %v1210_v59 = vsel %vm1042_vm2, %v2581_v58, 0.0 }
 0x45f   : > { %1211 = vadd.xlane.f32.xlu1 %v1210_v59 }
 0x470   : > { %1217 = vrot.lane.b32.xlu1 %v3653_v53, %s3050_s24  ;;  %s2948_s24 = scalar_lea.vmem %s2947_s4, 256 }
 0x471   : > { %p2950_p3 = scmp.lt.s32.totalorder %s2948_s24, %s2942_s7 }
 0x473   : > { %p2951_p0 = por %p2950_p3, %p2949_p8 }
 0x474   : > { %1360 = vrot.lane.b32.xlu1 %v3616_v16, %s3051_s6 }
 0x475   : > { %p2952_p5 = pnand %p2951_p0, %p2945_p11 }
 0x478   : > { %1358 = vrot.lane.b32.xlu1 %v3620_v21, %s3051_s6  ;;  %s3943_s6 = sld [smem:[#allocation49_spill]] }
 0x479   : > { %v1099_v60 = vpop.xlane.xlu0 %1098 }
 0x47a   : > { %2582 = vrcp.f32 %v1099_v60 }
 0x47d   : > { %v1422_v13 = vpop.permute.xlu0 %1421 }
 0x47e   : > { %v1427_v19 = vsel %vm1106_vm4, %v1422_v13, 0 }
 0x484   : > { %v2583_v61 = vpop.eup %2582 }
 0x485   : > { %v1101_v62 = vmul.f32 %v2583_v61, %v2579_v49 }
 0x487   : > { %v1102_v63 = vpack.c.bf16 %v1101_v62, %v1101_v62 }
 0x489   : > { %2315 = vmatmul.mubr.msk.bf16.vlgmr.msra.gmra.mrb[8].mxu0 %vm1042_vm2, %v1102_v63 }
 0x48a   : > { %2326 = vmatprep.mubr.msk.bf16.mxu0 %vm3049_vm0, %v3048_v0 }
 0x4ec   : > { %v1212_v3 = vpop.xlane.xlu1 %1211 }
 0x4ed   : > { %2584 = vrcp.f32 %v1212_v3 }
 0x4f0   : > { %v1218_v4 = vpop.permute.xlu1 %1217 }
 0x4f1   : > { %v1223_v5 = vsel %vm1106_vm4, %v1218_v4, 0 }
 0x4f2   : > { %2325 = vmatpush3.bf16.msra.mxu0 %v1223_v5 }
 0x4f3   : > { %2336 = vmatprep.subr.bf16.mxu0 %v3048_v0 }
 0x4f4   : > { %v1361_v22 = vpop.permute.xlu1 %1360 }
 0x4f5   : > { %v1366_v27 = vsel %vm1042_vm2, %v1361_v22, 0 }
 0x4f7   : > { %v2585_v7 = vpop.eup %2584 }
 0x4f8   : > { %v1214_v10 = vmul.f32 %v2585_v7, %v2581_v58  ;;  %v1359_v30 = vpop.permute.xlu1 %1358 }
 0x4fa   : > { %v1215_v11 = vpack.c.bf16 %v1214_v10, %v1214_v10 }
 0x4fc   : > { %2327 = vmatmul.mubr.msk.bf16.vlgmr.msra.gmra.mrb[12].mxu0 %vm1042_vm2, %v1215_v11 }
 0x4fd   : > { %2337 = vmatpush3.bf16.msra.mxu0 %v1316_v12  ;;  %2338 = vmatprep.mubr.msk.bf16.mxu0 %vm3049_vm0, %v3048_v0 }
 0x4fe   : > { %2348 = vmatprep.subr.bf16.mxu0 %v3048_v0 }
 0x55c   : > { %v1144_v14 = vpop.f32.mrb[8].mxu0 }
 0x55d   : > { %v1150_v15 = vpack.c.bf16 %v1144_v14, %v1144_v14  ;;  %v2316_v17 = vpop.f32.mrb[9].mxu0  ;;  %v1633_v14 = vsel %vm1106_vm4, %v834_v29, 0 }
 0x55e   : > { %v1147_v18 = vpop.f32.mrb[10].mxu0 }
 0x55f   : > { %v2317_v20 = vpop.f32.mrb[11].mxu0  ;;  %2339 = vmatmul.mubr.msk.bf16.vlgmr.msra.gmra.mrb[16].mxu0 %vm1042_vm2, %v1150_v15 }
 0x560   : > { %2349 = vmatpush3.bf16.msra.mxu0 %v1427_v19  ;;  %2350 = vmatprep.mubr.msk.bf16.mxu0 %vm3049_vm0, %v3048_v0 }
 0x561   : > { %2360 = vmatprep.subr.bf16.mxu0 %v3048_v0 }
 0x5cf   : > { %v1259_v23 = vpop.f32.mrb[12].mxu0 }
 0x5d0   : > { %v1265_v24 = vpack.c.bf16 %v1259_v23, %v1259_v23  ;;  %v2328_v25 = vpop.f32.mrb[13].mxu0 }
 0x5d1   : > { %v1262_v26 = vpop.f32.mrb[14].mxu0 }
 0x5d2   : > { %v2329_v28 = vpop.f32.mrb[15].mxu0  ;;  %2333 = vmatmul.mubr.msk.bf16.vlgmr.msra.gmra.mrb[12].mxu1 %vm1042_vm2, %v1265_v24 }
 0x5d3   : > { %2343 = vmatpush3.bf16.xpose.msra.mxu1 %v1366_v27  ;;  %2344 = vmatprep.mubr.msk.bf16.mxu1 %vm3049_vm0, %v3048_v0  ;;  %v2570_v27 = vld [vmem:[#allocation17] sm:$0xff]  }
 0x5d4   : > { %2354 = vmatprep.subr.bf16.mxu1 %v3048_v0 }
 0x5da   : > { %2345 = vmatmul.mubr.msk.bf16.vlgmr.msra.gmra.mrb[16].mxu1 %vm1042_vm2, %v1359_v30 }
 0x5db   : > { %2356 = vmatprep.mubr.msk.bf16.mxu1 %vm3049_vm0, %v3048_v0 }
 0x632   : > { %v1352_v31 = vpop.f32.mrb[16].mxu0 }
 0x633   : > { %v2340_v32 = vpop.f32.mrb[17].mxu0 }
 0x634   : > { %v1355_v33 = vpop.f32.mrb[18].mxu0 }
 0x635   : > { %v2341_v34 = vpop.f32.mrb[19].mxu0 }
 0x636   : > { %v2571_v34 = vld [vmem:[#allocation16] sm:$0xff]  }
 0x6a5   : > { %v1306_v35 = vpop.f32.mrb[12].mxu1 }
 0x6a6   : > { %v3695_v36 = vadd.f32 %v1352_v31, %v1306_v35  ;;  %v2334_v37 = vpop.f32.mrb[13].mxu1  ;;  %v2572_v35 = vld [vmem:[#allocation17 + $0x8] sm:$0xff]  }
 0x6a7   : > { %v1309_v38 = vpop.f32.mrb[14].mxu1  ;;  %v2574_v37 = vld [vmem:[#allocation20] sm:$0xff]  }
 0x6a8   : > { %v2335_v39 = vpop.f32.mrb[15].mxu1  ;;  %v2576_v38 = vld [vmem:[#allocation20 + $0x8] sm:$0xff]  }
 0x6a9   : > { %v2215_v39 = vld [vmem:[#allocation14] ss:$0 sm:$0xff] }
 0x6ad   : > { %v1402_v40 = vpop.f32.mrb[16].mxu1 }
 0x6ae   : > { %v1408_v41 = vsel %vm1089_vm3, -1e+10, %v1402_v40  ;;  %v2346_v42 = vpop.f32.mrb[17].mxu1 }
 0x6af   : > { %v1405_v43 = vpop.f32.mrb[18].mxu1  ;;  %v1409_v44 = vsel %vm1042_vm2, %v1408_v41, -inf }
 0x6b0   : > { %1410 = vmax.xlane.f32.xlu1 %v1409_v44  ;;  %v2347_v45 = vpop.f32.mrb[19].mxu1 }
 0x73d   : > { %v1411_v46 = vpop.xlane.xlu1 %1410 }
 0x73e   : > { %v1412_v47 = vsub.f32 %v1408_v41, %v1411_v46  ;;  %v2575_v46 = vld [vmem:[%s3942_s16] sm:$0xff]  }
 0x740   : > { %v1413_v48 = vmul.f32 1.442695, %v1412_v47 }
 0x742   : > { %2586 = vpow2.f32 %v1413_v48  ;;  %v2577_v48 = vld [vmem:[%s3942_s16 + $0x8] sm:$0xff]  }
 0x74c   : > { %v2587_v49 = vpop.eup %2586 }
 0x74d   : > { %v1415_v50 = vsel %vm1042_vm2, %v2587_v49, 0.0 }
 0x74e   : > { %1416 = vadd.xlane.f32.xlu0 %v1415_v50 }
 0x764   : > { %1519 = vrot.lane.b32.xlu0 %v3616_v16, %s3052_s12 }
 0x768   : > { %1517 = vrot.lane.b32.xlu0 %v3620_v21, %s3052_s12  ;;  %v833_v21 = vld [vmem:[%s3941_s26 + $0x8] sm:$0xf] }
 0x769   : > { %v1474_v58 = vsel %vm1106_vm4, %v833_v21, 0 }
 0x76a   : > { %2355 = vmatpush3.bf16.msra.mxu1 %v1474_v58 }
 0x76b   : > { %2366 = vmatprep.subr.bf16.mxu1 %v3048_v0 }
 0x7db   : > { %v1417_v51 = vpop.xlane.xlu0 %1416 }
 0x7dc   : > { %2588 = vrcp.f32 %v1417_v51 }
 0x7df   : > { %v1520_v55 = vpop.permute.xlu0 %1519 }
 0x7e0   : > { %v1525_v57 = vsel %vm1042_vm2, %v1520_v55, 0 }
 0x7e3   : > { %v1518_v16 = vpop.permute.xlu0 %1517 }
 0x7e6   : > { %v2589_v52 = vpop.eup %2588 }
 0x7e7   : > { %v1419_v54 = vmul.f32 %v2589_v52, %v2587_v49 }
 0x7e9   : > { %v1420_v56 = vpack.c.bf16 %v1419_v54, %v1419_v54 }
 0x7eb   : > { %2351 = vmatmul.mubr.msk.bf16.vlgmr.msra.gmra.mrb[20].mxu0 %vm1042_vm2, %v1420_v56 }
 0x7ec   : > { %2361 = vmatpush3.bf16.xpose.msra.mxu0 %v1525_v57  ;;  %2362 = vmatprep.mubr.msk.bf16.mxu0 %vm3049_vm0, %v3048_v0  ;;  %v2222_v57 = vld [vmem:[#allocation19] ss:$0 sm:$0xff] }
 0x7ed   : > { %2372 = vmatprep.subr.bf16.mxu0 %v3048_v0 }
 0x7f3   : > { %2363 = vmatmul.mubr.msk.bf16.vlgmr.msra.gmra.mrb[24].mxu0 %vm1042_vm2, %v1518_v16 }
 0x7f4   : > { %2374 = vmatprep.mubr.msk.bf16.mxu0 %vm3049_vm0, %v3048_v0  ;;  %2373 = vmatpush3.bf16.msra.mxu0 %v1633_v14 }
 0x7f5   : > { %2386 = vmatprep.subr.bf16.mxu0 %v3048_v0 }
 0x8be   : > { %v1463_v59 = vpop.f32.mrb[20].mxu0 }
 0x8bf   : > { %v1469_v60 = vpack.c.bf16 %v1463_v59, %v1463_v59  ;;  %v2352_v61 = vpop.f32.mrb[21].mxu0 }
 0x8c0   : > { %v1466_v62 = vpop.f32.mrb[22].mxu0 }
 0x8c1   : > { %v2353_v63 = vpop.f32.mrb[23].mxu0  ;;  %2357 = vmatmul.mubr.msk.bf16.vlgmr.msra.gmra.mrb[20].mxu1 %vm1042_vm2, %v1469_v60 }
 0x8c2   : > { %2368 = vmatprep.mubr.msk.bf16.mxu1 %vm3049_vm0, %v3048_v0 }
 0x8c6   : > { %v1561_v1 = vpop.f32.mrb[24].mxu0 }
 0x8c7   : > { %v1567_v2 = vsel %vm1089_vm3, -1e+10, %v1561_v1  ;;  %v2364_v3 = vpop.f32.mrb[25].mxu0 }
 0x8c8   : > { %v1564_v4 = vpop.f32.mrb[26].mxu0  ;;  %v1568_v5 = vsel %vm1042_vm2, %v1567_v2, -inf }
 0x8c9   : > { %1569 = vmax.xlane.f32.xlu0 %v1568_v5  ;;  %v2365_v7 = vpop.f32.mrb[27].mxu0 }
 0x8ca   : > { %v2230_v7 = vld [vmem:[%s3943_s6] ss:$0 sm:$0xff] }
 0x956   : > { %v1570_v9 = vpop.xlane.xlu0 %1569 }
 0x957   : > { %v1571_v10 = vsub.f32 %v1567_v2, %v1570_v9 }
 0x959   : > { %v1572_v11 = vmul.f32 1.442695, %v1571_v10 }
 0x95b   : > { %2590 = vpow2.f32 %v1572_v11 }
 0x965   : > { %v2591_v12 = vpop.eup %2590 }
 0x966   : > { %v1574_v13 = vsel %vm1042_vm2, %v2591_v12, 0.0 }
 0x967   : > { %1575 = vadd.xlane.f32.xlu1 %v1574_v13 }
 0x978   : > { %1580 = vrot.lane.b32.xlu1 %v3653_v53, %s3052_s12  ;;  %s3945_s12 = sld [smem:[#allocation51_spill]] }
 0x994   : > { %v1510_v15 = vpop.f32.mrb[20].mxu1 }
 0x995   : > { %v1516_v17 = vadd.f32 %v1510_v15, %v3695_v36  ;;  %v2358_v18 = vpop.f32.mrb[21].mxu1  ;;  %v2573_v36 = vld [vmem:[#allocation16 + $0x8] sm:$0xff]  }
 0x996   : > { %v1513_v19 = vpop.f32.mrb[22].mxu1 }
 0x997   : > { %v2359_v20 = vpop.f32.mrb[23].mxu1 }
 0x9f4   : > { %v1576_v22 = vpop.xlane.xlu1 %1575 }
 0x9f5   : > { %2592 = vrcp.f32 %v1576_v22 }
 0x9f8   : > { %v1581_v23 = vpop.permute.xlu1 %1580 }
 0x9f9   : > { %v1586_v53 = vsel %vm1106_vm4, %v1581_v23, 0 }
 0x9fa   : > { %2367 = vmatpush3.bf16.msra.mxu1 %v1586_v53 }
 0x9fb   : > { %2378 = vmatprep.subr.bf16.mxu1 %v3048_v0 }
 0x9ff   : > { %v2593_v24 = vpop.eup %2592 }
 0xa00   : > { %v1578_v25 = vmul.f32 %v2593_v24, %v2591_v12  ;;  %v2232_v24 = vld [vmem:[%s3945_s12] ss:$0 sm:$0xff] }
 0xa02   : > { %v1579_v26 = vpack.c.bf16 %v1578_v25, %v1578_v25 }
 0xa04   : > { %2369 = vmatmul.mubr.msk.bf16.vlgmr.msra.gmra.mrb[24].mxu1 %vm1042_vm2, %v1579_v26 }
 0xa05   : > { %2382 = vmatprep.mubr.msk.bf16.mxu1 %vm3049_vm0, %v3048_v0  ;;  %2379 = vmatpush3.bf16.msra.mxu1 %v2570_v27 }
 0xa06   : > { %2380 = vmatprep.subr.bf16.mxu1 %v3048_v0 }
 0xa09   : > { %2381 = vmatpush3.bf16.msra.mxu1 %v2572_v35 }
 0xa0a   : > { %2394 = vmatprep.subr.bf16.mxu1 %v3048_v0 }
 0xa0c   : > { %2383 = vmatmul.mubr.msk.bf16.vlgmr.msra.gmra.mrb[28].mxu1 %vm876_vm1, %v3602_v8 }
 0xa0d   : > { %2398 = vmatprep.mubr.msk.bf16.mxu1 %vm3049_vm0, %v3048_v0  ;;  %2395 = vmatpush3.bf16.msra.mxu1 %v2574_v37 }
 0xa0e   : > { %2396 = vmatprep.subr.bf16.mxu1 %v3048_v0 }
 0xa11   : > { %2397 = vmatpush3.bf16.msra.mxu1 %v2576_v38 }
 0xa14   : > { %2399 = vmatmul.mubr.msk.bf16.vlgmr.msra.gmra.mrb[32].mxu1 %vm876_vm1, %v3602_v8 }
 0xad7   : > { %v1622_v28 = vpop.f32.mrb[24].mxu1 }
 0xad8   : > { %v1628_v30 = vpack.c.bf16 %v1622_v28, %v1622_v28  ;;  %v2370_v31 = vpop.f32.mrb[25].mxu1 }
 0xad9   : > { %v1625_v32 = vpop.f32.mrb[26].mxu1 }
 0xada   : > { %v2371_v33 = vpop.f32.mrb[27].mxu1  ;;  %2375 = vmatmul.mubr.msk.bf16.vlgmr.msra.gmra.mrb[28].mxu0 %vm1042_vm2, %v1628_v30 }
 0xadb   : > { %2390 = vmatprep.mubr.msk.bf16.mxu0 %vm3049_vm0, %v3048_v0  ;;  %2387 = vmatpush3.bf16.msra.mxu0 %v2571_v34 }
 0xadc   : > { %2388 = vmatprep.subr.bf16.mxu0 %v3048_v0 }
 0xadf   : > { %2389 = vmatpush3.bf16.msra.mxu0 %v2573_v36  ;;  %v1730_v8 = vpop.f32.mrb[28].mxu1 }
 0xae0   : > { %2402 = vmatprep.subr.bf16.mxu0 %v3048_v0  ;;  %v2384_v49 = vpop.f32.mrb[29].mxu1 }
 0xae1   : > { %v1733_v50 = vpop.f32.mrb[30].mxu1 }
 0xae2   : > { %v2385_v51 = vpop.f32.mrb[31].mxu1 }
 0xae7   : > { %v1850_v52 = vpop.f32.mrb[32].mxu1 }
 0xae8   : > { %v2400_v54 = vpop.f32.mrb[33].mxu1 }
 0xae9   : > { %v1853_v55 = vpop.f32.mrb[34].mxu1 }
 0xaea   : > { %v2401_v56 = vpop.f32.mrb[35].mxu1 }
 0xbad   : > { %v1669_v40 = vpop.f32.mrb[28].mxu0 }
 0xbae   : > { %v1675_v41 = vadd.f32 %v1669_v40, %v1516_v17  ;;  %v2376_v42 = vpop.f32.mrb[29].mxu0 }
 0xbaf   : > { %v1672_v43 = vpop.f32.mrb[30].mxu0 }
 0xbb0   : > { %v1682_v44 = vadd.f32 %v2215_v39, %v1675_v41  ;;  %v2377_v45 = vpop.f32.mrb[31].mxu0 }
 0xbb2   : > { %v1683_v47 = vpack.c.bf16 %v1682_v44, %v1682_v44 }
 0xbb4   : > { %2391 = vmatmul.mubr.msk.bf16.vlgmr.msra.gmra.mrb[32].mxu0 %vm876_vm1, %v1683_v47 }
 0xbb5   : > { %2403 = vmatpush3.bf16.msra.mxu0 %v2575_v46  ;;  %2406 = vmatprep.mubr.msk.bf16.mxu0 %vm3049_vm0, %v3048_v0 }
 0xbb6   : > { %2404 = vmatprep.subr.bf16.mxu0 %v3048_v0 }
 0xbb9   : > { %2405 = vmatpush3.bf16.msra.mxu0 %v2577_v48 }
 0xbbc   : > { %2407 = vmatmul.mubr.msk.bf16.vlgmr.msra.gmra.mrb[36].mxu0 %vm876_vm1, %v1683_v47 }
 0xc87   : > { %v1785_v16 = vpop.f32.mrb[32].mxu0 }
 0xc88   : > { %v1786_v21 = vadd.f32 %v1785_v16, %v1730_v8  ;;  %v2392_v58 = vpop.f32.mrb[33].mxu0 }
 0xc89   : > { %v1788_v59 = vpop.f32.mrb[34].mxu0 }
 0xc8a   : > { %v1797_v60 = vadd.f32 %v2222_v57, %v1786_v21  ;;  %v2393_v61 = vpop.f32.mrb[35].mxu0 }
 0xc8c   : > { %v2223_v62 = vmul.f32 -1.442695, %v1797_v60 }
 0xc8e   : > { %2594 = vpow2.f32 %v2223_v62 }
 0xc8f   : > { %v1902_v0 = vpop.f32.mrb[36].mxu0 }
 0xc90   : > { %v1903_v63 = vadd.f32 %v1902_v0, %v1850_v52  ;;  %v2408_v1 = vpop.f32.mrb[37].mxu0 }
 0xc91   : > { %v1905_v2 = vpop.f32.mrb[38].mxu0 }
 0xc92   : > { %v2409_v3 = vpop.f32.mrb[39].mxu0  ;;  %v1914_v9 = vadd.f32 %v2230_v7, %v1903_v63 }
 0xc98   : > { %v2595_v4 = vpop.eup %2594 }
 0xc99   : > { %v1801_v5 = vadd.f32 1.0, %v2595_v4 }
 0xc9b   : > { %2596 = vrcp.f32 %v1801_v5 }
 0xca5   : > { %v2597_v10 = vpop.eup %2596 }
 0xca6   : > { %v1915_v11 = vmul.f32 %v2597_v10, %v1914_v9 }
 0xca8   : > { %v1916_v12 = vadd.f32 %v1915_v11, %v3597_v6  ;;  %v2231_v6 = vld [vmem:[%s3944_s21] ss:$0 sm:$0xff] }
 0xcaa   : > { %v1917_v13 = vsel %vm876_vm1, %v1916_v12, 0.0 }
 0xcab   : > { %1918 = vadd.xlane.f32.xlu1 %v1917_v13 }
 0xd38   : > { %v1919_v29 = vpop.xlane.xlu1 %1918 }
 0xd39   : > { %v1921_v14 = vmul.f32 0.03125, %v1919_v29 }
 0xd3b   : > { %v1922_v15 = vsub.f32 %v1916_v12, %v1921_v14 }
 0xd3d   : > { %v1923_v17 = vmul.f32 %v1922_v15, %v1922_v15 }
 0xd3f   : > { %v1924_v18 = vsel %vm876_vm1, %v1923_v17, 0.0 }
 0xd40   : > { %1925 = vadd.xlane.f32.xlu0 %v1924_v18 }
 0xdcd   : > { %v1926_v19 = vpop.xlane.xlu0 %1925 }
 0xdce   : > { %v1927_v20 = vmul.f32 0.03125, %v1926_v19 }
 0xdd0   : > { %v1928_v22 = vadd.f32 1e-05, %v1927_v20 }
 0xdd2   : > { %2598 = vrsqrt.f32 %v1928_v22 }
 0xddc   : > { %v2599_v23 = vpop.eup %2598 }
 0xddd   : > { %v1930_v53 = vmul.f32 %v2599_v23, %v1922_v15 }
 0xddf   : > { %v1937_v25 = vmul.f32 %v2231_v6, %v1930_v53 }
 0xde1   : > { %v1944_v26 = vadd.f32 %v2232_v24, %v1937_v25 }
 0xde3   : > { %1945 = vst.msk [vmem:[%s811_s5] sm:$0xff] %vm876_vm1, %v1944_v26 }
 0xde4   : > { %2955 = shalt.err (!%p2952_p5)
}
 0xde5   : > { %s2956_s28 = scalar_lea.hbm %s3780_s14, 128  ;;  %s2960_s9 = scalar_lea.hbm %s3946_s29, 256 }
 0xde6   : > { %p2957_p9 = scmp.ne.s32.totalorder %s3780_s14, %s2956_s28  ;;  %p2961_p7 = scmp.lt.u32.totalorder %s3780_s14, %s3946_s29 }
 0xde7   : > { %p2962_p13 = scmp.lt.u32.totalorder %s2960_s9, %s2956_s28  ;;  %p2964_p4 = scmp.lt.u32.totalorder %s2956_s28, %s3780_s14 }
 0xde8   : > { %p2958_p6 = pnand %p2957_p9, %p3947_p10 }
 0xde9   : > { %p2963_p12 = por %p2962_p13, %p2961_p7 }
 0xdea   : > { %p2959_p1 = pneg %p2958_p6 }
 0xdeb   : > { %p2965_p2 = por %p2964_p4, %p2963_p12 }
 0xded   : > { %p2966_p11 = pnand %p2965_p2, %p2959_p1 }
 0xdef   : > { %2969 = shalt.err (!%p2966_p11)
}
 0xdf0   : > { %2452 = dma.vmem_to_hbm [thread:$0]  (%p3947_p10), %s3782_s19, 128, %s3780_s14, %s1947_s22  }
 0xdf1 PF: > { %s3948_s3 = sld [smem:[#allocation31_spill]]  ;;  %s3949_s12 = sld [smem:[#allocation35_spill]] }
 0xdf2   : > { %s3950_s23 = sld [smem:[#allocation32_spill]] }
 0xdf7   : > { %s1972_s5 = sand.u32 1, %s3948_s3   ;;  %p3951_p8 = scmp.ne.s32.totalorder %s3949_s12, 0 }
 0xdf8   : > { %p3952_p3 = scmp.ge.s32.totalorder %s3950_s23, 2  ;;  %s1973_s17 = scalar_lea.sflag [#allocation4], %s1972_s5 }
 0xdfa   : > { %p2493_p0 = pnand %p3952_p3, %p3951_p8 }
 0xdfc   : > { %3015 = dma.done.wait (!%p2493_p0), %s1973_s17, 128  }
 0xdfd   : > { %3017 = vsyncadd (!%p2493_p0), %s1973_s17, 4294967168  ;;  %s3953_s21 = sld [smem:[#allocation33_spill]]  ;;  %s3954_s1 = sld [smem:[#allocation34_spill]] }
 0xdfe   : > { %s3955_s0 = smov %s3024_s30  ;;  %s3956_s30 = smov %s3028_s20 }
 0xe03   : > { %p40_p5 = scmp.ge.s32.totalorder %s3953_s21, 4   ;;  %s3957_s20 = smov %s3954_s1 }
 0xe05   :  { %42 = sbr.rel (!%p40_p5) target bundleno = 30 (0x1e), region = 201 }
 0xe0c   :  { %1978 = vsyncpa [#allocation3], 1 }
 0xe0d   :  { %1980 = vsyncpa [#allocation3 + $0x1], 1 }
 0xe0e   :  { %1981 = vsyncpa [#allocation6], 1 }
 0xe0f   :  { %1983 = vsyncpa [#allocation6 + $0x1], 1 }
 0xe10   :  { %1984 = vsyncpa [#allocation9], 1 }
 0xe11   :  { %1985 = vsyncpa [#allocation12], 1 }
 0xe12   :  { %1986 = vsyncpa [#allocation15], 1 }
 0xe13   :  { %1987 = vsyncpa [#allocation18], 1 }
 0xe14   :  { %1988 = vsyncpa [#allocation21], 1 }
 0xe15   :  { %1989 = vsyncpa [#allocation4], 1 }
 0xe16   :  { %1991 = vsyncpa [#allocation4 + $0x1], 1 }

</bundles_post_ra>
